<compile_context>
chip_gen: v7x
topology: tpu7x:2x2x1
jax: 0.10.0
libtpu: 0.0.40
codegen_flags: <defaults>
</compile_context>

<pallas_src>
import functools
import math

import jax
import jax.numpy as jnp
from jax.experimental import pallas as pl
from jax.experimental.pallas import tpu as pltpu


_NEG_LARGE = -1e30  # finite mask sentinel: avoids inf/NaN special cases


def hier_attention_kernel(
    word_mem_ref,   # (Bb, K, M)    K = S1*S2, native memory dtype
    doc_mem_ref,    # (Bb, S1, M)   native memory dtype
    bias_w_ref,     # (Bb, 1, D)    f32 = dec @ Wd_w.T + topic @ Wt_w.T (hoisted)
    bias_d_ref,     # (Bb, 1, D)    f32 = dec @ Wd_d.T + topic @ Wt_d.T (hoisted)
    wmask_ref,      # (Bb, 1, K)    f32 additive mask bias (0 / -1e30), lane-dense
    dmask_ref,      # (Bb, 1, S1)   f32 additive mask bias
    wm_ref,         # (2, M, D)     stacked memory-projection weights (word, doc)
    v_ref,          # (2, 1, D)     stacked v rows (word, doc)
    out_ref,        # (Bb, 1, K + PAD_M) f32:  [ rattn | ctx | zero pad ]
    *, S1, S2, M, D, Bb, PAD_M):
    f32 = jnp.float32
    K = S1 * S2

    word_mem = word_mem_ref[...]                      # (Bb, K, M)
    doc_mem = doc_mem_ref[...]                        # (Bb, S1, M)

    # ---- memory projections: one MXU matmul per level over all Bb batches ---
    enc_w = jnp.dot(word_mem.reshape(Bb * K, M), wm_ref[0],
                    preferred_element_type=f32).reshape(Bb, K, D)
    enc_d = jnp.dot(doc_mem.reshape(Bb * S1, M), wm_ref[1],
                    preferred_element_type=f32).reshape(Bb, S1, D)

    e_w = jnp.tanh(enc_w + bias_w_ref[...])           # (Bb, K, D)   f32 EUP
    e_d = jnp.tanh(enc_d + bias_d_ref[...])           # (Bb, S1, D)

    # ---- v-projection on the VPU + lane reduce -------------------------------
    v_w = v_ref[0].astype(f32)                        # (1, D)
    v_d = v_ref[1].astype(f32)
    word_scores = jnp.sum(e_w * v_w, axis=-1)         # (Bb, K)
    doc_scores = jnp.sum(e_d * v_d, axis=-1)          # (Bb, S1)

    # ---- masked softmaxes (additive mask bias; exact reciprocal) -------------
    ws = (word_scores + wmask_ref[:, 0, :]).reshape(Bb, S1, S2)
    ws = ws - jnp.max(ws, axis=-1, keepdims=True)
    we = jnp.exp(ws)
    word_attn = we * pl.reciprocal(jnp.sum(we, axis=-1, keepdims=True),
                                   approx=False)      # (Bb, S1, S2)

    ds = doc_scores + dmask_ref[:, 0, :]              # (Bb, S1)
    ds = ds - jnp.max(ds, axis=-1, keepdims=True)
    de = jnp.exp(ds)
    doc_attn = de * pl.reciprocal(jnp.sum(de, axis=-1, keepdims=True),
                                  approx=False)       # (Bb, S1)

    # ---- rescale + context ----------------------------------------------------
    rescaled = doc_attn[:, :, None] * word_attn       # (Bb, S1, S2)
    rattn = rescaled.reshape(Bb, 1, K)                # lane-dense

    # context on the MXU: (Bb, 1, K) @ (Bb, K, M) -> (Bb, 1, M), f32 accumulate
    ctx = jnp.einsum('bqk,bkm->bqm', rattn.astype(word_mem.dtype), word_mem,
                     preferred_element_type=f32)      # (Bb, 1, M)

    # ---- packed lane-dense output store ---------------------------------------
    out_ref[:, :, :K] = rattn.astype(f32)
    out_ref[:, :, K:K + M] = ctx
    if PAD_M > M:                                     # static condition
        out_ref[:, :, K + M:] = jnp.zeros((Bb, 1, PAD_M - M), f32)


def _chip_info():
    """Returns (tensorcores_per_chip, physical_vmem_bytes_per_core)."""
    kind = ""
    try:
        kind = jax.devices()[0].device_kind.lower()
    except Exception:
        pass
    if "v7" in kind:
        num_tc, vmem_cap = 2, 64 << 20          # v7x: 2 TCs, 64 MiB VMEM / TC
    else:
        num_tc, vmem_cap = 1, 128 << 20         # v5e / v6e: 1 TC, 128 MiB VMEM
    try:
        info = pltpu.get_tpu_info()
        vmem_cap = int(getattr(info, "vmem_capacity_bytes", vmem_cap))
    except Exception:
        pass
    return num_tc, vmem_cap


def hier_attention(decoder_state, doc_memory, word_memory, topic_dist,
                   doc_mask, word_mask, params):
    B, S1, S2, M = word_memory.shape
    D = decoder_state.shape[-1]
    K = S1 * S2
    PAD_M = max(M, math.ceil(M / 128) * 128)    # pad ctx lanes to 128 multiple
    OUT_W = K + PAD_M
    f32 = jnp.float32
    mem_dtype = word_memory.dtype

    # --- hoisted decoder/topic projections: two tiny (B, D) XLA matmuls -------
    dec = decoder_state.astype(f32)
    top = topic_dist.astype(f32)
    bias_w = (dec @ params["word_decode_project"].T.astype(f32)
              + top @ params["word_topic_project"].T.astype(f32)).reshape(B, 1, D)
    bias_d = (dec @ params["doc_decode_project"].T.astype(f32)
              + top @ params["doc_topic_project"].T.astype(f32)).reshape(B, 1, D)

    # --- packed weights, kept in the memory dtype (bf16 in -> bf16 MXU) -------
    wm_stack = jnp.stack([params["word_memory_project"].T,
                          params["doc_memory_project"].T]).astype(mem_dtype)
    v_stack = jnp.stack([params["word_v"], params["doc_v"]]).astype(mem_dtype)

    word_mem_flat = word_memory.reshape(B, K, M)        # keep native dtype
    # additive mask biases, lane-dense
    wmask_bias = jnp.where(word_mask.reshape(B, 1, K) == 0,
                           _NEG_LARGE, 0.0).astype(f32)
    dmask_bias = jnp.where(doc_mask.reshape(B, 1, S1) == 0,
                           _NEG_LARGE, 0.0).astype(f32)

    # --- chip-aware batch blocking with honest VMEM accounting ----------------
    num_tc, vmem_cap = _chip_info()
    in_isz = jnp.dtype(mem_dtype).itemsize

    def per_step_bytes(bb):
        io = bb * ((K * M + S1 * M) * in_isz            # memories
                   + (2 * D + K + S1) * 4               # biases + mask biases
                   + OUT_W * 4)                         # packed output
        weights = (2 * M * D + 2 * D) * in_isz
        # intermediates: enc/e (word+doc), scores/attn/rescaled, ctx, out temp
        inter = bb * (2 * (K + S1) * D + 4 * K + 4 * S1 + PAD_M + OUT_W) * 4
        return 2 * (io + weights) + inter               # x2: double-buffering

    budget = min(vmem_cap // 5, 24 << 20)
    steps = num_tc if B >= num_tc else 1                # >1 step only pays on v7x
    while steps < B and per_step_bytes(math.ceil(B / steps)) > budget:
        steps *= 2
    steps = min(steps, B)
    Bb = math.ceil(B / steps)
    steps = math.ceil(B / Bb)
    B_pad = steps * Bb
    vmem_limit = int(min(vmem_cap * 9 // 10,
                         max(32 << 20, 2 * per_step_bytes(Bb))))

    def pad_b(x):
        if B_pad == B:
            return x
        return jnp.pad(x, [(0, B_pad - B)] + [(0, 0)] * (x.ndim - 1))

    operands = [pad_b(x) for x in (word_mem_flat, doc_memory, bias_w, bias_d,
                                   wmask_bias, dmask_bias)]
    operands += [wm_stack, v_stack]

    def bspec(shape):                                   # batch-blocked spec
        rest = (0,) * (len(shape) - 1)
        return pl.BlockSpec(tuple(shape), lambda i, _r=rest: (i,) + _r)

    def fspec(shape):                                   # replicated full spec
        zero = (0,) * len(shape)
        return pl.BlockSpec(tuple(shape), lambda i, _z=zero: _z)

    in_specs = [
        bspec((Bb, K, M)),
        bspec((Bb, S1, M)),
        bspec((Bb, 1, D)),
        bspec((Bb, 1, D)),
        bspec((Bb, 1, K)),
        bspec((Bb, 1, S1)),
        fspec((2, M, D)),
        fspec((2, 1, D)),
    ]
    out_spec = bspec((Bb, 1, OUT_W))
    out_shape = jax.ShapeDtypeStruct((B_pad, 1, OUT_W), f32)

    kernel = functools.partial(hier_attention_kernel,
                               S1=S1, S2=S2, M=M, D=D, Bb=Bb, PAD_M=PAD_M)

    out = pl.pallas_call(
        kernel,
        out_shape=out_shape,
        grid_spec=pltpu.PrefetchScalarGridSpec(
            num_scalar_prefetch=0,
            grid=(steps,),
            in_specs=in_specs,
            out_specs=out_spec),
        compiler_params=pltpu.CompilerParams(
            dimension_semantics=("parallel",),
            vmem_limit_bytes=vmem_limit),
    )(*operands)

    rescaled = out[:B, 0, :K].reshape(B, S1, S2)        # (B, S1, S2)
    context = out[:B, 0, K:K + M]                       # (B, M)
    return context, rescaled


def reference(decoder_state, doc_memory, word_memory, topic_dist,
              doc_mask, word_mask, params):
    """Pure-JAX transcription of HierAttention.forward (for correctness check)."""
    def linear(x, w):  # w: (out, in)
        return x @ w.T

    enc_w = linear(word_memory, params["word_memory_project"])
    dec_w = linear(decoder_state, params["word_decode_project"])
    top_w = linear(topic_dist, params["word_topic_project"])
    e_w = jnp.tanh(enc_w + dec_w[:, None, None, :] + top_w[:, None, None, :])
    word_scores = linear(e_w, params["word_v"])[..., 0]           # (B, S1, S2)

    enc_d = linear(doc_memory, params["doc_memory_project"])
    dec_d = linear(decoder_state, params["doc_decode_project"])
    top_d = linear(topic_dist, params["doc_topic_project"])
    e_d = jnp.tanh(enc_d + dec_d[:, None, :] + top_d[:, None, :])
    doc_scores = linear(e_d, params["doc_v"])[..., 0]             # (B, S1)

    word_scores = jnp.where(word_mask == 0, -jnp.inf, word_scores)
    word_attn = jax.nn.softmax(word_scores, axis=-1)
    doc_scores = jnp.where(doc_mask == 0, -jnp.inf, doc_scores)
    doc_attn = jax.nn.softmax(doc_scores, axis=-1)

    rescaled = doc_attn[..., None] * word_attn
    context = jnp.einsum('bqw,bqwd->bd', rescaled, word_memory)
    return context, rescaled


if __name__ == "__main__":
    B, S1, S2, M, D, T = 2, 8, 16, 32, 32, 8

    key = jax.random.PRNGKey(0)
    keys = jax.random.split(key, 16)

    decoder_state = jax.random.normal(keys[0], (B, D), jnp.float32)
    doc_memory = jax.random.normal(keys[1], (B, S1, M), jnp.float32)
    word_memory = jax.random.normal(keys[2], (B, S1, S2, M), jnp.float32)
    topic_dist = jax.nn.softmax(jax.random.normal(keys[3], (B, T), jnp.float32), -1)

    # masks: random 0/1 but guarantee at least one valid position per softmax row
    doc_mask = (jax.random.uniform(keys[4], (B, S1)) > 0.3).astype(jnp.float32)
    doc_mask = doc_mask.at[:, 0].set(1.0)
    word_mask = (jax.random.uniform(keys[5], (B, S1, S2)) > 0.3).astype(jnp.float32)
    word_mask = word_mask.at[:, :, 0].set(1.0)

    # deterministic synthetic parameters, nn.Linear convention (out, in)
    params = {
        "word_v":              0.1 * jax.random.normal(keys[6],  (1, D), jnp.float32),
        "word_decode_project": 0.1 * jax.random.normal(keys[7],  (D, D), jnp.float32),
        "word_topic_project":  0.1 * jax.random.normal(keys[8],  (D, T), jnp.float32),
        "word_memory_project": 0.1 * jax.random.normal(keys[9],  (D, M), jnp.float32),
        "doc_v":               0.1 * jax.random.normal(keys[10], (1, D), jnp.float32),
        "doc_decode_project":  0.1 * jax.random.normal(keys[11], (D, D), jnp.float32),
        "doc_topic_project":   0.1 * jax.random.normal(keys[12], (D, T), jnp.float32),
        "doc_memory_project":  0.1 * jax.random.normal(keys[13], (D, M), jnp.float32),
    }

    ctx, rattn = hier_attention(decoder_state, doc_memory, word_memory,
                                topic_dist, doc_mask, word_mask, params)
    jax.block_until_ready((ctx, rattn))

    ctx_ref, rattn_ref = reference(decoder_state, doc_memory, word_memory,
                                   topic_dist, doc_mask, word_mask, params)

    assert ctx.shape == (B, M) and rattn.shape == (B, S1, S2)
    assert jnp.allclose(ctx, ctx_ref, rtol=1e-5, atol=1e-5), "context mismatch"
    assert jnp.allclose(rattn, rattn_ref, rtol=1e-5, atol=1e-5), "attn mismatch"

    print("KERNEL_OK")
</pallas_src>

<mosaic_0001>
module attributes {stable_mosaic.version = 11 : i64} {
  func.func @hier_attention_kernel(%arg0: i32, %arg1: memref<2x128x32xf32, #tpu.memory_space<vmem>>, %arg2: memref<2x8x32xf32, #tpu.memory_space<vmem>>, %arg3: memref<2x1x32xf32, #tpu.memory_space<vmem>>, %arg4: memref<2x1x32xf32, #tpu.memory_space<vmem>>, %arg5: memref<2x1x128xf32, #tpu.memory_space<vmem>>, %arg6: memref<2x1x8xf32, #tpu.memory_space<vmem>>, %arg7: memref<2x32x32xf32, #tpu.memory_space<vmem>>, %arg8: memref<2x1x32xf32, #tpu.memory_space<vmem>>, %arg9: memref<2x1x256xf32, #tpu.memory_space<vmem>>) attributes {dimension_semantics = [#tpu.dimension_semantics<parallel>], iteration_bounds = array<i64: 1>, scalar_prefetch = 0 : i64, scratch_operands = 0 : i64, tpu.core_type = #tpu.core_type<tc>, window_params = [{transform_indices = @transform_0, window_bounds = array<i64: 2, 128, 32>}, {transform_indices = @transform_1, window_bounds = array<i64: 2, 8, 32>}, {transform_indices = @transform_2, window_bounds = array<i64: 2, 1, 32>}, {transform_indices = @transform_3, window_bounds = array<i64: 2, 1, 32>}, {transform_indices = @transform_4, window_bounds = array<i64: 2, 1, 128>}, {transform_indices = @transform_5, window_bounds = array<i64: 2, 1, 8>}, {pipeline_mode = #tpu.pipeline_mode<synchronous>, transform_indices = @transform_6, window_bounds = array<i64: 2, 32, 32>}, {pipeline_mode = #tpu.pipeline_mode<synchronous>, transform_indices = @transform_7, window_bounds = array<i64: 2, 1, 32>}, {transform_indices = @transform_8, window_bounds = array<i64: 2, 1, 256>}]} {
    %c0 = arith.constant 0 : index
    %c0_0 = arith.constant 0 : index
    %c0_1 = arith.constant 0 : index
    %0 = vector.load %arg1[%c0, %c0_0, %c0_1] : memref<2x128x32xf32, #tpu.memory_space<vmem>>, vector<2x128x32xf32>
    %c0_2 = arith.constant 0 : index
    %c0_3 = arith.constant 0 : index
    %c0_4 = arith.constant 0 : index
    %1 = vector.load %arg2[%c0_2, %c0_3, %c0_4] : memref<2x8x32xf32, #tpu.memory_space<vmem>>, vector<2x8x32xf32>
    %2 = vector.shape_cast %0 : vector<2x128x32xf32> to vector<256x32xf32>
    %c0_5 = arith.constant 0 : index
    %c0_6 = arith.constant 0 : index
    %c0_7 = arith.constant 0 : index
    %3 = vector.load %arg7[%c0_5, %c0_6, %c0_7] : memref<2x32x32xf32, #tpu.memory_space<vmem>>, vector<1x32x32xf32>
    %4 = vector.shape_cast %3 : vector<1x32x32xf32> to vector<32x32xf32>
    %cst = arith.constant dense<0.000000e+00> : vector<256x32xf32>
    %5 = tpu.matmul %2, %4, %cst {dimension_numbers = #tpu.dot_dimension_numbers<[1], [0], [0], [1], [0, 0, 1, 1], [], []>} : vector<256x32xf32>, vector<32x32xf32>, vector<256x32xf32> -> vector<256x32xf32>
    %6 = vector.shape_cast %5 : vector<256x32xf32> to vector<2x128x32xf32>
    %7 = vector.shape_cast %1 : vector<2x8x32xf32> to vector<16x32xf32>
    %c1 = arith.constant 1 : index
    %c0_8 = arith.constant 0 : index
    %c0_9 = arith.constant 0 : index
    %8 = vector.load %arg7[%c1, %c0_8, %c0_9] : memref<2x32x32xf32, #tpu.memory_space<vmem>>, vector<1x32x32xf32>
    %9 = vector.shape_cast %8 : vector<1x32x32xf32> to vector<32x32xf32>
    %cst_10 = arith.constant dense<0.000000e+00> : vector<16x32xf32>
    %10 = tpu.matmul %7, %9, %cst_10 {dimension_numbers = #tpu.dot_dimension_numbers<[1], [0], [0], [1], [0, 0, 1, 1], [], []>} : vector<16x32xf32>, vector<32x32xf32>, vector<16x32xf32> -> vector<16x32xf32>
    %11 = vector.shape_cast %10 : vector<16x32xf32> to vector<2x8x32xf32>
    %c0_11 = arith.constant 0 : index
    %c0_12 = arith.constant 0 : index
    %c0_13 = arith.constant 0 : index
    %12 = vector.load %arg3[%c0_11, %c0_12, %c0_13] : memref<2x1x32xf32, #tpu.memory_space<vmem>>, vector<2x1x32xf32>
    %13 = vector.broadcast %12 : vector<2x1x32xf32> to vector<2x128x32xf32>
    %14 = arith.addf %6, %13 : vector<2x128x32xf32>
    %15 = math.tanh %14 : vector<2x128x32xf32>
    %c0_14 = arith.constant 0 : index
    %c0_15 = arith.constant 0 : index
    %c0_16 = arith.constant 0 : index
    %16 = vector.load %arg4[%c0_14, %c0_15, %c0_16] : memref<2x1x32xf32, #tpu.memory_space<vmem>>, vector<2x1x32xf32>
    %17 = vector.broadcast %16 : vector<2x1x32xf32> to vector<2x8x32xf32>
    %18 = arith.addf %11, %17 : vector<2x8x32xf32>
    %19 = math.tanh %18 : vector<2x8x32xf32>
    %c0_17 = arith.constant 0 : index
    %c0_18 = arith.constant 0 : index
    %c0_19 = arith.constant 0 : index
    %20 = vector.load %arg8[%c0_17, %c0_18, %c0_19] : memref<2x1x32xf32, #tpu.memory_space<vmem>>, vector<1x1x32xf32>
    %21 = vector.shape_cast %20 : vector<1x1x32xf32> to vector<1x32xf32>
    %c1_20 = arith.constant 1 : index
    %c0_21 = arith.constant 0 : index
    %c0_22 = arith.constant 0 : index
    %22 = vector.load %arg8[%c1_20, %c0_21, %c0_22] : memref<2x1x32xf32, #tpu.memory_space<vmem>>, vector<1x1x32xf32>
    %23 = vector.shape_cast %22 : vector<1x1x32xf32> to vector<1x32xf32>
    %24 = vector.shape_cast %21 : vector<1x32xf32> to vector<1x1x32xf32>
    %25 = vector.broadcast %24 : vector<1x1x32xf32> to vector<2x128x32xf32>
    %26 = arith.mulf %15, %25 : vector<2x128x32xf32>
    %cst_23 = arith.constant dense<0.000000e+00> : vector<2x128xf32>
    %27 = vector.multi_reduction <add>, %26, %cst_23 [2] : vector<2x128x32xf32> to vector<2x128xf32>
    %28 = vector.shape_cast %23 : vector<1x32xf32> to vector<1x1x32xf32>
    %29 = vector.broadcast %28 : vector<1x1x32xf32> to vector<2x8x32xf32>
    %30 = arith.mulf %19, %29 : vector<2x8x32xf32>
    %cst_24 = arith.constant dense<0.000000e+00> : vector<2x8xf32>
    %31 = vector.multi_reduction <add>, %30, %cst_24 [2] : vector<2x8x32xf32> to vector<2x8xf32>
    %c0_25 = arith.constant 0 : index
    %c0_26 = arith.constant 0 : index
    %c0_27 = arith.constant 0 : index
    %32 = vector.load %arg5[%c0_25, %c0_26, %c0_27] : memref<2x1x128xf32, #tpu.memory_space<vmem>>, vector<2x1x128xf32>
    %33 = vector.shape_cast %32 : vector<2x1x128xf32> to vector<2x128xf32>
    %34 = arith.addf %27, %33 : vector<2x128xf32>
    %35 = vector.shape_cast %34 : vector<2x128xf32> to vector<2x8x16xf32>
    %cst_28 = arith.constant dense<0xFF800000> : vector<2x8xf32>
    %36 = vector.multi_reduction <maximumf>, %35, %cst_28 [2] : vector<2x8x16xf32> to vector<2x8xf32>
    %37 = vector.shape_cast %36 : vector<2x8xf32> to vector<2x8x1xf32>
    %38 = vector.broadcast %37 : vector<2x8x1xf32> to vector<2x8x16xf32>
    %39 = arith.subf %35, %38 : vector<2x8x16xf32>
    %40 = math.exp %39 : vector<2x8x16xf32>
    %cst_29 = arith.constant dense<0.000000e+00> : vector<2x8xf32>
    %41 = vector.multi_reduction <add>, %40, %cst_29 [2] : vector<2x8x16xf32> to vector<2x8xf32>
    %42 = vector.shape_cast %41 : vector<2x8xf32> to vector<2x8x1xf32>
    %43 = tpu.reciprocal %42 : vector<2x8x1xf32> -> vector<2x8x1xf32>
    %44 = vector.broadcast %43 : vector<2x8x1xf32> to vector<2x8x16xf32>
    %45 = arith.mulf %40, %44 : vector<2x8x16xf32>
    %c0_30 = arith.constant 0 : index
    %c0_31 = arith.constant 0 : index
    %c0_32 = arith.constant 0 : index
    %46 = vector.load %arg6[%c0_30, %c0_31, %c0_32] : memref<2x1x8xf32, #tpu.memory_space<vmem>>, vector<2x1x8xf32>
    %47 = vector.shape_cast %46 : vector<2x1x8xf32> to vector<2x8xf32>
    %48 = arith.addf %31, %47 : vector<2x8xf32>
    %cst_33 = arith.constant dense<0xFF800000> : vector<2xf32>
    %49 = vector.multi_reduction <maximumf>, %48, %cst_33 [1] : vector<2x8xf32> to vector<2xf32>
    %50 = vector.shape_cast %49 : vector<2xf32> to vector<2x1xf32>
    %51 = vector.broadcast %50 : vector<2x1xf32> to vector<2x8xf32>
    %52 = arith.subf %48, %51 : vector<2x8xf32>
    %53 = math.exp %52 : vector<2x8xf32>
    %cst_34 = arith.constant dense<0.000000e+00> : vector<2xf32>
    %54 = vector.multi_reduction <add>, %53, %cst_34 [1] : vector<2x8xf32> to vector<2xf32>
    %55 = vector.shape_cast %54 : vector<2xf32> to vector<2x1xf32>
    %56 = tpu.reciprocal %55 : vector<2x1xf32> -> vector<2x1xf32>
    %57 = vector.broadcast %56 : vector<2x1xf32> to vector<2x8xf32>
    %58 = arith.mulf %53, %57 : vector<2x8xf32>
    %59 = vector.shape_cast %58 : vector<2x8xf32> to vector<2x8x1xf32>
    %60 = vector.broadcast %59 : vector<2x8x1xf32> to vector<2x8x16xf32>
    %61 = arith.mulf %60, %45 : vector<2x8x16xf32>
    %62 = vector.shape_cast %61 : vector<2x8x16xf32> to vector<2x1x128xf32>
    "tpu.trace_start"() <{level = 10 : i32, message = "bqk,bkm->bqm"}> : () -> ()
    %cst_35 = arith.constant dense<0.000000e+00> : vector<2x1x32xf32>
    %63 = tpu.matmul %62, %0, %cst_35 {dimension_numbers = #tpu.dot_dimension_numbers<[2], [1], [1], [2], [0, 0, 0, 1, 1, 2], [0], [0]>} : vector<2x1x128xf32>, vector<2x128x32xf32>, vector<2x1x32xf32> -> vector<2x1x32xf32>
    "tpu.trace_stop"() : () -> ()
    %c0_36 = arith.constant 0 : index
    %c0_37 = arith.constant 0 : index
    %c0_38 = arith.constant 0 : index
    %64 = vector.load %arg9[%c0_36, %c0_37, %c0_38] : memref<2x1x256xf32, #tpu.memory_space<vmem>>, vector<2x1x128xf32>
    tpu.vector_store %arg9[%c0_36, %c0_37, %c0_38], %62 {strides = array<i32>} : memref<2x1x256xf32, #tpu.memory_space<vmem>>, vector<2x1x128xf32>,
    %c0_39 = arith.constant 0 : index
    %c0_40 = arith.constant 0 : index
    %c128 = arith.constant 128 : index
    %65 = vector.load %arg9[%c0_39, %c0_40, %c128] : memref<2x1x256xf32, #tpu.memory_space<vmem>>, vector<2x1x32xf32>
    tpu.vector_store %arg9[%c0_39, %c0_40, %c128], %63 {strides = array<i32>} : memref<2x1x256xf32, #tpu.memory_space<vmem>>, vector<2x1x32xf32>,
    %cst_41 = arith.constant 0.000000e+00 : f32
    %66 = vector.broadcast %cst_41 : f32 to vector<2x1x96xf32>
    %c0_42 = arith.constant 0 : index
    %c0_43 = arith.constant 0 : index
    %c160 = arith.constant 160 : index
    %67 = vector.load %arg9[%c0_42, %c0_43, %c160] : memref<2x1x256xf32, #tpu.memory_space<vmem>>, vector<2x1x96xf32>
    tpu.vector_store %arg9[%c0_42, %c0_43, %c160], %66 {strides = array<i32>} : memref<2x1x256xf32, #tpu.memory_space<vmem>>, vector<2x1x96xf32>,
    return
  }
  func.func @transform_0(%arg0: i32) -> (i32, i32, i32) {
    %c0_i32 = arith.constant 0 : i32
    %c0_i32_0 = arith.constant 0 : i32
    %c0_i32_1 = arith.constant 0 : i32
    return %arg0, %c0_i32, %c0_i32_0 : i32, i32, i32
  }
  func.func @transform_1(%arg0: i32) -> (i32, i32, i32) {
    %c0_i32 = arith.constant 0 : i32
    %c0_i32_0 = arith.constant 0 : i32
    %c0_i32_1 = arith.constant 0 : i32
    return %arg0, %c0_i32, %c0_i32_0 : i32, i32, i32
  }
  func.func @transform_2(%arg0: i32) -> (i32, i32, i32) {
    %c0_i32 = arith.constant 0 : i32
    %c0_i32_0 = arith.constant 0 : i32
    %c0_i32_1 = arith.constant 0 : i32
    return %arg0, %c0_i32, %c0_i32_0 : i32, i32, i32
  }
  func.func @transform_3(%arg0: i32) -> (i32, i32, i32) {
    %c0_i32 = arith.constant 0 : i32
    %c0_i32_0 = arith.constant 0 : i32
    %c0_i32_1 = arith.constant 0 : i32
    return %arg0, %c0_i32, %c0_i32_0 : i32, i32, i32
  }
  func.func @transform_4(%arg0: i32) -> (i32, i32, i32) {
    %c0_i32 = arith.constant 0 : i32
    %c0_i32_0 = arith.constant 0 : i32
    %c0_i32_1 = arith.constant 0 : i32
    return %arg0, %c0_i32, %c0_i32_0 : i32, i32, i32
  }
  func.func @transform_5(%arg0: i32) -> (i32, i32, i32) {
    %c0_i32 = arith.constant 0 : i32
    %c0_i32_0 = arith.constant 0 : i32
    %c0_i32_1 = arith.constant 0 : i32
    return %arg0, %c0_i32, %c0_i32_0 : i32, i32, i32
  }
  func.func @transform_6(%arg0: i32) -> (i32, i32, i32) {
    %c0_i32 = arith.constant 0 : i32
    %c0_i32_0 = arith.constant 0 : i32
    %c0_i32_1 = arith.constant 0 : i32
    %c0_i32_2 = arith.constant 0 : i32
    return %c0_i32, %c0_i32_0, %c0_i32_1 : i32, i32, i32
  }
  func.func @transform_7(%arg0: i32) -> (i32, i32, i32) {
    %c0_i32 = arith.constant 0 : i32
    %c0_i32_0 = arith.constant 0 : i32
    %c0_i32_1 = arith.constant 0 : i32
    %c0_i32_2 = arith.constant 0 : i32
    return %c0_i32, %c0_i32_0, %c0_i32_1 : i32, i32, i32
  }
  func.func @transform_8(%arg0: i32) -> (i32, i32, i32) {
    %c0_i32 = arith.constant 0 : i32
    %c0_i32_0 = arith.constant 0 : i32
    %c0_i32_1 = arith.constant 0 : i32
    return %arg0, %c0_i32, %c0_i32_0 : i32, i32, i32
  }
}

</mosaic_0001>

<bundles_post_ra>
// kernel: tpu_custom_call.1
= control target key start
LH: loop header
LB: loop body
LE: loop exit
PB: predicated region body
PF: predicated region fallthrough
CT: control target
= control target key end

     0   :  { %vm68_vm0 = vcmask 261120   ;;  %s3038_s0 = inlined_call_operand.vmem [shape: f32[2,128,32], index: 0, kind: input, shape index: {}]   ;;  %s3039_s1 = inlined_call_operand.vmem [shape: f32[2,8,32], index: 1, kind: input, shape index: {}]   ;;  %s3040_s2 = inlined_call_operand.vmem [shape: f32[2,1,32], index: 2, kind: input, shape index: {}]   ;;  %s3041_s3 = inlined_call_operand.vmem [shape: f32[2,1,32], index: 3, kind: input, shape index: {}]   ;;  %s3042_s4 = inlined_call_operand.vmem [shape: f32[2,1,128], index: 4, kind: input, shape index: {}]   ;;  %s3043_s5 = inlined_call_operand.vmem [shape: f32[2,1,8], index: 5, kind: input, shape index: {}]   ;;  %s3044_s6 = inlined_call_operand.vmem [shape: f32[2,32,32], index: 6, kind: input, shape index: {}]   ;;  %s3045_s7 = inlined_call_operand.vmem [shape: f32[2,1,32], index: 7, kind: input, shape index: {}]   ;;  %s3046_s8 = inlined_call_operand.hbm [shape: f32[2,1,256], index: 8, kind: output, shape index: {}]  }
   0x1   :  { %v64_v0 = vld [vmem:[%s3044_s6] sm:$0xff]  ;;  %v65_v1 = vld [vmem:[%s3044_s6 + $0x8] sm:$0xff]  ;;  %v66_v2 = vld [vmem:[%s3044_s6 + $0x10] sm:$0xff] }
   0x2   :  { %v2004_v3 = vpack.c.bf16 %v65_v1, %v64_v0  ;;  %v67_v4 = vld [vmem:[%s3044_s6 + $0x18] sm:$0xff]  ;;  %v2270_v5 = vld [vmem:[%s3038_s0] sm:$0xff]  ;;  %v2275_v6 = vld [vmem:[%s3038_s0 + $0x8] sm:$0xff] }
   0x3   :  { %v2008_v7 = vpack.c.bf16 %v67_v4, %v66_v2  ;;  %1875 = vmatprep.mubr.msk.f32.mxu0 %vm68_vm0, %v2270_v5  ;;  %v2284_v9 = vld [vmem:[%s3038_s0 + $0xc0] sm:$0xff]  ;;  %v2289_v10 = vld [vmem:[%s3038_s0 + $0xc8] sm:$0xff]  ;;  %v2294_v11 = vld [vmem:[%s3038_s0 + $0xd0] sm:$0xff] }
   0x4   :  { %3064 = vst [vmem:[#allocation5_spill] sm:$0xff] %v2284_v9  ;;  %3065 = vst [vmem:[#allocation6_spill] sm:$0xff] %v2289_v10  ;;  %2005 = vmatprep.subr.bf16.mxu0 %v2004_v3  ;;  %2068 = vmatprep.subr.bf16.mxu1 %v2004_v3  ;;  %v1774_v13 = vld [vmem:[%s3044_s6 + $0x20] sm:$0xff]  ;;  %v1775_v14 = vld [vmem:[%s3044_s6 + $0x28] sm:$0xff] }
   0x5   :  { %3066 = vst [vmem:[#allocation7_spill] sm:$0xff] %v2294_v11  ;;  %v2307_v15 = vld [vmem:[%s3038_s0 + $0xd8] sm:$0xff]  ;;  %2007 = vmatpush3.bf16.msra.mxu0 %v2004_v3  ;;  %2070 = vmatpush3.bf16.msra.mxu1 %v2004_v3  ;;  %v2314_v17 = vld [vmem:[%s3038_s0 + $0x10] sm:$0xff]  ;;  %v2012_v19 = vpack.c.bf16 %v1775_v14, %v1774_v13  ;;  %v2326_v21 = vld [vmem:[%s3038_s0 + $0xe0] sm:$0xff] }
   0x6   :  { %3067 = vst [vmem:[#allocation8_spill] sm:$0xff] %v2307_v15  ;;  %v2319_v18 = vld [vmem:[%s3038_s0 + $0x18] sm:$0xff]  ;;  %2009 = vmatprep.subr.bf16.mxu0 %v2008_v7  ;;  %2069 = vmatprep.subr.bf16.mxu1 %v2008_v7  ;;  %3068 = vst [vmem:[#allocation9_spill] sm:$0xff] %v2326_v21  ;;  %v2331_v22 = vld [vmem:[%s3038_s0 + $0xe8] sm:$0xff] }
   0x7   :  { %3069 = vst [vmem:[#allocation10_spill] sm:$0xff] %v2331_v22  ;;  %v1776_v23 = vld [vmem:[%s3044_s6 + $0x30] sm:$0xff]  ;;  %1911 = vmatprep.mubr.msk.f32.mxu1 %vm68_vm0, %v2284_v9  ;;  %v1777_v25 = vld [vmem:[%s3044_s6 + $0x38] sm:$0xff]  ;;  %v2358_v29 = vld [vmem:[%s3038_s0 + $0x20] sm:$0xff] }
   0x8   :  { %v2346_v26 = vld [vmem:[%s3038_s0 + $0xf0] sm:$0xff]  ;;  %v2351_v27 = vld [vmem:[%s3038_s0 + $0xf8] sm:$0xff]  ;;  %v2363_v30 = vld [vmem:[%s3038_s0 + $0x28] sm:$0xff]  ;;  %v2016_v35 = vpack.c.bf16 %v1777_v25, %v1776_v23 }
   0x9   :  { %3070 = vst [vmem:[#allocation11_spill] sm:$0xff] %v2346_v26  ;;  %3071 = vst [vmem:[#allocation12_spill] sm:$0xff] %v2351_v27  ;;  %2011 = vmatpush3.bf16.msra.mxu0 %v2008_v7  ;;  %2071 = vmatpush3.bf16.msra.mxu1 %v2008_v7  ;;  %v2370_v32 = vld [vmem:[%s3038_s0 + $0x30] sm:$0xff]  ;;  %v2375_v33 = vld [vmem:[%s3038_s0 + $0x38] sm:$0xff] }
   0xa   :  { %3072 = vst [vmem:[#allocation13_spill] sm:$0xff] %v2370_v32  ;;  %v2380_v34 = vld [vmem:[%s3038_s0 + $0x40] sm:$0xff]  ;;  %2013 = vmatprep.subr.bf16.mxu1 %v2012_v19  ;;  %v2387_v37 = vld [vmem:[%s3038_s0 + $0x48] sm:$0xff]  ;;  %v2392_v38 = vld [vmem:[%s3038_s0 + $0x50] sm:$0xff] }
   0xb   :  { %3073 = vst [vmem:[#allocation14_spill] sm:$0xff] %v2380_v34  ;;  %3074 = vst [vmem:[#allocation15_spill] sm:$0xff] %v2387_v37  ;;  %v2397_v39 = vld [vmem:[%s3038_s0 + $0x58] sm:$0xff]  ;;  %v2406_v42 = vld [vmem:[%s3038_s0 + $0x60] sm:$0xff] }
   0xc   :  { %3075 = vst [vmem:[#allocation16_spill] sm:$0xff] %v2392_v38  ;;  %3076 = vst [vmem:[#allocation17_spill] sm:$0xff] %v2397_v39  ;;  %v2411_v43 = vld [vmem:[%s3038_s0 + $0x68] sm:$0xff]  ;;  %v2416_v44 = vld [vmem:[%s3038_s0 + $0x70] sm:$0xff]  ;;  %1876 = vmatmul.mubr.msk.f32.vlgmr.msra.gmra.mrb[0].mxu0 %vm68_vm0, %v2275_v6  ;;  %1912 = vmatmul.mubr.msk.f32.vlgmr.msra.gmra.mrb[0].mxu1 %vm68_vm0, %v2289_v10 }
   0xd   :  { %3077 = vst [vmem:[#allocation18_spill] sm:$0xff] %v2406_v42  ;;  %3078 = vst [vmem:[#allocation19_spill] sm:$0xff] %v2411_v43  ;;  %v2427_v46 = vld [vmem:[%s3038_s0 + $0x78] sm:$0xff]  ;;  %v2432_v47 = vld [vmem:[%s3038_s0 + $0x80] sm:$0xff]  ;;  %1914 = vmatprep.mubr.msk.f32.mxu1 %vm68_vm0, %v2294_v11  ;;  %2015 = vmatpush3.bf16.msra.mxu1 %v2012_v19 }
   0xe   :  { %3079 = vst [vmem:[#allocation20_spill] sm:$0xff] %v2416_v44  ;;  %3080 = vst [vmem:[#allocation21_spill] sm:$0xff] %v2427_v46  ;;  %v2437_v48 = vld [vmem:[%s3038_s0 + $0x88] sm:$0xff]  ;;  %v2448_v51 = vld [vmem:[%s3038_s0 + $0x90] sm:$0xff]  ;;  %1878 = vmatprep.mubr.msk.f32.mxu0 %vm68_vm0, %v2314_v17  ;;  %2017 = vmatprep.subr.bf16.mxu1 %v2016_v35 }
   0xf   :  { %v2453_v52 = vld [vmem:[%s3038_s0 + $0x98] sm:$0xff]  ;;  %v2458_v53 = vld [vmem:[%s3038_s0 + $0xa0] sm:$0xff]  ;;  %v2467_v55 = vld [vmem:[%s3038_s0 + $0xa8] sm:$0xff] }
  0x10   :  { %v2472_v56 = vld [vmem:[%s3038_s0 + $0xb0] sm:$0xff]  ;;  %v2477_v57 = vld [vmem:[%s3038_s0 + $0xb8] sm:$0xff]  ;;  %v1789_v60 = vld [vmem:[%s3043_s5] ss:$0 sm:$0xff]  ;;  %1915 = vmatmul.mubr.msk.f32.gmra.mrb[2].mxu1 %vm68_vm0, %v2307_v15  ;;  %1879 = vmatmul.mubr.msk.f32.gmra.mrb[2].mxu0 %vm68_vm0, %v2319_v18 }
  0x11   :  { %13 = vsyncpa [#allocation3], 0  ;;  %1917 = vmatprep.mubr.msk.f32.mxu1 %vm68_vm0, %v2326_v21  ;;  %2019 = vmatpush3.bf16.msra.mxu1 %v2016_v35  ;;  %v2497_v61 = vld [vmem:[%s3042_s4] ss:$0 sm:$0xff]  ;;  %v1790_v62 = vld [vmem:[%s3043_s5 + $0x1] ss:$0 sm:$0xff] }
  0x12   :  { %1881 = vmatprep.mubr.msk.f32.mxu0 %vm68_vm0, %v2358_v29  ;;  %1304 = vbcast.lane.b32.xlu1 %v1789_v60, 256  ;;  %v62_v63 = vld [vmem:[%s3039_s1] sm:$0xff]  ;;  %v63_v0 = vld [vmem:[%s3039_s1 + $0x8] sm:$0xff]  ;;  %vm1064_vm1 = vcmask 130112   ;;  %vm1201_vm2 = vcmask 1041409   ;;  %vm1331_vm3 = vcmask 58368  }
  0x13   :  { %740 = vbcast.lane.b32.xlu0 %v2497_v61, 264  ;;  %v2567_v1 = vld [vmem:[%s3040_s2] ss:$0 sm:$0xff]  ;;  %v2572_v2 = vld [vmem:[%s3040_s2 + $0x1] ss:$0 sm:$0xff]  ;;  %vm1268_vm4 = vcmask 130048  }
  0x14   :  { %1918 = vmatmul.mubr.msk.f32.gmra.mrb[4].mxu1 %vm68_vm0, %v2331_v22  ;;  %1882 = vmatmul.mubr.msk.f32.gmra.mrb[4].mxu0 %vm68_vm0, %v2363_v30  ;;  %s2201_s12 = smov 32   ;;  %s2202_s13 = smov 64   ;;  %vm2203_vm5 = vmmov 0   ;;  %vm1557_vm6 = vcmask 392192   ;;  %vm1560_vm7 = vcmask 523264   ;;  %vm1563_vm8 = vcmask 654336  }
  0x15   :  { %1920 = vmatprep.mubr.msk.f32.mxu1 %vm68_vm0, %v2346_v26  ;;  %1884 = vmatprep.mubr.msk.f32.mxu0 %vm68_vm0, %v2370_v32  ;;  %s2204_s14 = smov 48   ;;  %s2205_s15 = smov 80   ;;  %vm1566_vm9 = vcmask 785408   ;;  %vm1569_vm10 = vcmask 916480  }
  0x16   :  { %1307 = vbcast.lane.b32.xlu1 %v1790_v62, 256  ;;  %s2206_s16 = smov 96   ;;  %s2207_s17 = smov 112  }
  0x17   :  { %752 = vbcast.lane.b32.xlu0 %v2497_v61, 288  ;;  %s2208_s18 = smov [#allocation2]  }
  0x18   :  { %1921 = vmatmul.mubr.msk.f32.gmra.mrb[6].mxu1 %vm68_vm0, %v2351_v27  ;;  %1885 = vmatmul.mubr.msk.f32.gmra.mrb[6].mxu0 %vm68_vm0, %v2375_v33  ;;  %s1731_s0 = sshll.u32 %s2208_s18, 4  ;;  %s1732_s0 = int_to_ptr.vmem [resolvable:$true] %s1731_s0 }
  0x19   :  { %1931 = vmatprep.mubr.msk.f32.mxu1 %vm68_vm0, %v62_v63  ;;  %1887 = vmatprep.mubr.msk.f32.mxu0 %vm68_vm0, %v2380_v34  ;;  %s2171_s19 = scalar_lea.vmem %s1732_s0, 64  ;;  %p2176_p1 = scmp.lt.s32.totalorder %s1732_s0, %s1732_s0 }
  0x1a   :  { %736 = vbcast.lane.b32.xlu1 %v2497_v61, 256  ;;  %p2172_p0 = scmp.ne.s32.totalorder %s1732_s0, %s2171_s19  ;;  %p2177_p2 = scmp.lt.s32.totalorder %s2171_s19, %s2171_s19 }
  0x1b   :  { %760 = vbcast.lane.b32.xlu0 %v2497_v61, 304 }
  0x1c   :  { %1932 = vmatmul.mubr.msk.f32.vlgmr.msra.gmra.mrb[8].mxu1 %vm68_vm0, %v63_v0  ;;  %1888 = vmatmul.mubr.msk.f32.gmra.mrb[8].mxu0 %vm68_vm0, %v2387_v37  ;;  %p2178_p3 = por %p2177_p2, %p2176_p1 }
  0x1d   :  { %1890 = vmatprep.mubr.msk.f32.mxu0 %vm68_vm0, %v2392_v38 }
  0x1e   :  { %744 = vbcast.lane.b32.xlu1 %v2497_v61, 272  ;;  %p2179_p4 = pnand %p2178_p3, %p2172_p0 }
  0x1f   :  { %768 = vbcast.lane.b32.xlu0 %v2497_v61, 320 }
  0x20   :  { %1891 = vmatmul.mubr.msk.f32.gmra.mrb[10].mxu0 %vm68_vm0, %v2397_v39 }
  0x21   :  { %1893 = vmatprep.mubr.msk.f32.mxu0 %vm68_vm0, %v2406_v42 }
  0x22   :  { %748 = vbcast.lane.b32.xlu1 %v2497_v61, 280 }
  0x24   :  { %1894 = vmatmul.mubr.msk.f32.gmra.mrb[12].mxu0 %vm68_vm0, %v2411_v43 }
  0x25   :  { %1896 = vmatprep.mubr.msk.f32.mxu0 %vm68_vm0, %v2416_v44 }
  0x26   :  { %756 = vbcast.lane.b32.xlu1 %v2497_v61, 296 }
  0x28   :  { %1897 = vmatmul.mubr.msk.f32.gmra.mrb[14].mxu0 %vm68_vm0, %v2427_v46 }
  0x29   :  { %1899 = vmatprep.mubr.msk.f32.mxu0 %vm68_vm0, %v2432_v47 }
  0x2a   :  { %764 = vbcast.lane.b32.xlu1 %v2497_v61, 312 }
  0x2c   :  { %1900 = vmatmul.mubr.msk.f32.gmra.mrb[16].mxu0 %vm68_vm0, %v2437_v48 }
  0x2d   :  { %1902 = vmatprep.mubr.msk.f32.mxu0 %vm68_vm0, %v2448_v51 }
  0x2e   :  { %772 = vbcast.lane.b32.xlu1 %v2497_v61, 328 }
  0x30   :  { %1903 = vmatmul.mubr.msk.f32.gmra.mrb[18].mxu0 %vm68_vm0, %v2453_v52 }
  0x31   :  { %1905 = vmatprep.mubr.msk.f32.mxu0 %vm68_vm0, %v2458_v53 }
  0x34   :  { %1906 = vmatmul.mubr.msk.f32.gmra.mrb[20].mxu0 %vm68_vm0, %v2467_v55 }
  0x35   :  { %1908 = vmatprep.mubr.msk.f32.mxu0 %vm68_vm0, %v2472_v56 }
  0x38   :  { %1909 = vmatmul.mubr.msk.f32.gmra.mrb[22].mxu0 %vm68_vm0, %v2477_v57 }
  0xdf   :  { %v1877_v3 = vpop.f32.mrb[0].mxu0  ;;  %v1913_v4 = vpop.f32.mrb[0].mxu1 }
  0xe0   :  { %v491_v7 = vadd.f32 %v1877_v3, %v2567_v1  ;;  %v515_v13 = vadd.f32 %v1913_v4, %v2572_v2  ;;  %v351_v14 = vpop.f32.mrb[1].mxu1  ;;  %v231_v19 = vpop.f32.mrb[1].mxu0 }
  0xe1   :  { %v514_v23 = vadd.f32 %v2572_v2, %v351_v14  ;;  %v490_v25 = vadd.f32 %v2567_v1, %v231_v19 }
  0xe2   :  { %2089 = vtanh.f32 %v491_v7 }
  0xe3   :  { %2091 = vtanh.f32 %v515_v13  ;;  %v1916_v35 = vpop.f32.mrb[2].mxu1  ;;  %v1880_v60 = vpop.f32.mrb[2].mxu0 }
  0xe4   :  { %2093 = vtanh.f32 %v514_v23  ;;  %v517_v62 = vadd.f32 %v1916_v35, %v2572_v2  ;;  %v361_v63 = vpop.f32.mrb[3].mxu1  ;;  %v493_v0 = vadd.f32 %v1880_v60, %v2567_v1  ;;  %v241_v28 = vpop.f32.mrb[3].mxu0  ;;  %v2586_v23 = vld [vmem:[%s3045_s7] ss:$0 sm:$0xff] }
  0xe5   :  { %2095 = vtanh.f32 %v490_v25  ;;  %v492_v3 = vadd.f32 %v2567_v1, %v241_v28  ;;  %v516_v19 = vadd.f32 %v2572_v2, %v361_v63 }
  0xe6   :  { %2097 = vtanh.f32 %v517_v62 }
  0xe7   :  { %v1919_v4 = vpop.f32.mrb[4].mxu1  ;;  %v1883_v49 = vpop.f32.mrb[4].mxu0  ;;  %2099 = vtanh.f32 %v493_v0 }
  0xe8   :  { %v519_v14 = vadd.f32 %v1919_v4, %v2572_v2  ;;  %v371_v7 = vpop.f32.mrb[5].mxu1  ;;  %v251_v13 = vpop.f32.mrb[5].mxu0  ;;  %2101 = vtanh.f32 %v492_v3  ;;  %v495_v0 = vadd.f32 %v1883_v49, %v2567_v1  ;;  %v1783_v3 = vld [vmem:[%s3041_s3 + $0x1] ss:$0 sm:$0xff] }
  0xea   :  { %2103 = vtanh.f32 %v519_v14 }
  0xeb   :  { %v1922_v25 = vpop.f32.mrb[6].mxu1  ;;  %v1886_v35 = vpop.f32.mrb[6].mxu0  ;;  %2105 = vtanh.f32 %v516_v19  ;;  %v494_v19 = vadd.f32 %v2567_v1, %v251_v13 }
  0xec   :  { %v2090_v28 = vpop.eup %2089  ;;  %v521_v60 = vadd.f32 %v1922_v25, %v2572_v2  ;;  %v2589_v62 = vpop.f32.mrb[7].mxu1  ;;  %v1782_v25 = vld [vmem:[%s3041_s3] ss:$0 sm:$0xff] }
  0xed   :  { %v2592_v4 = vpop.f32.mrb[7].mxu0  ;;  %v2092_v24 = vpop.eup %2091  ;;  %v582_v63 = vmul.f32 %v2090_v28, %v2586_v23 }
  0xee   :  { %v2094_v14 = vpop.eup %2093  ;;  %2107 = vtanh.f32 %v521_v60  ;;  %v606_v45 = vmul.f32 %v2092_v24, %v2586_v23 }
  0xef   :  { %v2096_v16 = vpop.eup %2095  ;;  %v616_v49 = vsel %vm68_vm0, %v582_v63, 0.0  ;;  %v1933_v41 = vpop.f32.mrb[8].mxu1  ;;  %2109 = vtanh.f32 %v495_v0 }
  0xf0   :  { %v2604_v40 = vpop.f32.mrb[8].mxu0  ;;  %v2098_v28 = vpop.eup %2097  ;;  %v688_v12 = vsel %vm68_vm0, %v606_v45, 0.0  ;;  %617 = vadd.xlane.f32.xlu1 %v616_v49  ;;  %v569_v36 = vadd.f32 %v1933_v41, %v1783_v3  ;;  %v581_v24 = vmul.f32 %v2096_v16, %v2586_v23  ;;  %v605_v45 = vmul.f32 %v2094_v14, %v2586_v23 }
  0xf1   :  { %v467_v60 = vpop.f32.mrb[9].mxu1  ;;  %v271_v59 = vpop.f32.mrb[9].mxu0  ;;  %689 = vadd.xlane.f32.xlu0 %v688_v12  ;;  %v608_v58 = vmul.f32 %v2098_v28, %v2586_v23 }
  0xf2   :  { %v568_v31 = vadd.f32 %v1782_v25, %v467_v60  ;;  %v2100_v63 = vpop.eup %2099  ;;  %2111 = vtanh.f32 %v569_v36  ;;  %v613_v13 = vsel %vm68_vm0, %v581_v24, 0.0  ;;  %v498_v41 = vadd.f32 %v2567_v1, %v271_v59 }
  0xf3   :  { %v2102_v20 = vpop.eup %2101  ;;  %v694_v54 = vsel %vm68_vm0, %v608_v58, 0.0  ;;  %2113 = vtanh.f32 %v494_v19  ;;  %v1892_v0 = vpop.f32.mrb[10].mxu0  ;;  %v518_v36 = vadd.f32 %v2572_v2, %v371_v7  ;;  %v584_v19 = vmul.f32 %v2100_v63, %v2586_v23 }
  0xf4   :  { %v2104_v3 = vpop.eup %2103  ;;  %2115 = vtanh.f32 %v568_v31  ;;  %614 = vadd.xlane.f32.xlu1 %v613_v13  ;;  %v583_v12 = vmul.f32 %v2102_v20, %v2586_v23  ;;  %v501_v16 = vadd.f32 %v1892_v0, %v2567_v1  ;;  %v281_v25 = vpop.f32.mrb[11].mxu0  ;;  %v685_v31 = vsel %vm68_vm0, %v605_v45, 0.0 }
  0xf5   :  { %695 = vadd.xlane.f32.xlu0 %v694_v54  ;;  %2117 = vtanh.f32 %v498_v41  ;;  %v500_v58 = vadd.f32 %v2567_v1, %v281_v25  ;;  %v610_v14 = vmul.f32 %v2104_v3, %v2586_v23  ;;  %v2106_v59 = vpop.eup %2105  ;;  %v497_v7 = vadd.f32 %v1886_v35, %v2567_v1  ;;  %v1786_v35 = vld [vmem:[%s3045_s7 + $0x1] ss:$0 sm:$0xff] }
  0xf6   :  { %v619_v49 = vsel %vm68_vm0, %v583_v12, 0.0  ;;  %2119 = vtanh.f32 %v501_v16  ;;  %v622_v63 = vsel %vm68_vm0, %v584_v19, 0.0  ;;  %v607_v0 = vmul.f32 %v2106_v59, %v2586_v23 }
  0xf7   :  { %2121 = vtanh.f32 %v500_v58  ;;  %v1895_v20 = vpop.f32.mrb[12].mxu0  ;;  %v700_v41 = vsel %vm68_vm0, %v610_v14, 0.0  ;;  %v496_v16 = vadd.f32 %v2567_v1, %v2592_v4 }
  0xf8   :  { %v2108_v28 = vpop.eup %2107  ;;  %686 = vadd.xlane.f32.xlu1 %v685_v31  ;;  %v503_v54 = vadd.f32 %v1895_v20, %v2567_v1  ;;  %v291_v60 = vpop.f32.mrb[13].mxu0  ;;  %2123 = vtanh.f32 %v518_v36 }
  0xf9   :  { %620 = vadd.xlane.f32.xlu0 %v619_v49  ;;  %v502_v24 = vadd.f32 %v2567_v1, %v291_v60  ;;  %v2110_v13 = vpop.eup %2109  ;;  %v612_v45 = vmul.f32 %v2108_v28, %v2586_v23  ;;  %v691_v28 = vsel %vm68_vm0, %v607_v0, 0.0 }
  0xfa   :  { %2125 = vtanh.f32 %v503_v54  ;;  %v586_v49 = vmul.f32 %v2110_v13, %v2586_v23  ;;  %v520_v54 = vadd.f32 %v2572_v2, %v2589_v62 }
  0xfb   :  { %2127 = vtanh.f32 %v502_v24  ;;  %v1898_v3 = vpop.f32.mrb[14].mxu0  ;;  %v706_v31 = vsel %vm68_vm0, %v612_v45, 0.0 }
  0xfc   :  { %v2112_v12 = vpop.eup %2111  ;;  %623 = vadd.xlane.f32.xlu1 %v622_v63  ;;  %2129 = vtanh.f32 %v497_v7  ;;  %v505_v25 = vadd.f32 %v1898_v3, %v2567_v1  ;;  %v301_v36 = vpop.f32.mrb[15].mxu0  ;;  %v628_v45 = vsel %vm68_vm0, %v586_v49, 0.0 }
  0xfd   :  { %v2114_v58 = vpop.eup %2113  ;;  %701 = vadd.xlane.f32.xlu0 %v700_v41  ;;  %v504_v14 = vadd.f32 %v2567_v1, %v301_v36  ;;  %v716_v19 = vmul.f32 %v2112_v12, %v1786_v35 }
  0xfe   :  { %v2116_v59 = vpop.eup %2115  ;;  %2131 = vtanh.f32 %v505_v25  ;;  %v585_v63 = vmul.f32 %v2114_v58, %v2586_v23  ;;  %v499_v58 = vadd.f32 %v2604_v40, %v2567_v1 }
  0xff   :  { %v2118_v20 = vpop.eup %2117  ;;  %2133 = vtanh.f32 %v504_v14  ;;  %v1901_v7 = vpop.f32.mrb[16].mxu0  ;;  %v720_v62 = vsel %vm68_vm0, %v716_v19, 0.0  ;;  %v715_v14 = vmul.f32 %v2116_v59, %v1786_v35 }
 0x100   :  { %v2120_v4 = vpop.eup %2119  ;;  %692 = vadd.xlane.f32.xlu1 %v691_v28  ;;  %2135 = vtanh.f32 %v496_v16  ;;  %v2641_v60 = vmul.f32 %v2118_v20, %v2586_v23  ;;  %v507_v24 = vadd.f32 %v1901_v7, %v2572_v2  ;;  %v311_v13 = vpop.f32.mrb[17].mxu0  ;;  %v625_v19 = vsel %vm68_vm0, %v585_v63, 0.0 }
 0x101   :  { %v2122_v41 = vpop.eup %2121  ;;  %707 = vadd.xlane.f32.xlu0 %v706_v31  ;;  %v2647_v0 = vmul.f32 %v2120_v4, %v2586_v23  ;;  %v506_v3 = vadd.f32 %v2572_v2, %v311_v13 }
 0x102   :  { %v2652_v12 = vmul.f32 %v2122_v41, %v2586_v23  ;;  %2137 = vtanh.f32 %v507_v24  ;;  %v2124_v16 = vpop.eup %2123 }
 0x103   :  { %2139 = vtanh.f32 %v506_v3  ;;  %v1904_v25 = vpop.f32.mrb[18].mxu0  ;;  %v609_v40 = vmul.f32 %v2124_v16, %v2586_v23 }
 0x104   :  { %v2126_v36 = vpop.eup %2125  ;;  %629 = vadd.xlane.f32.xlu1 %v628_v45  ;;  %v509_v49 = vadd.f32 %v1904_v25, %v2572_v2  ;;  %v321_v31 = vpop.f32.mrb[19].mxu0  ;;  %2141 = vtanh.f32 %v520_v54  ;;  %v717_v54 = vsel %vm68_vm0, %v715_v14, 0.0 }
 0x105   :  { %v2128_v20 = vpop.eup %2127  ;;  %721 = vadd.xlane.f32.xlu0 %v720_v62  ;;  %v508_v28 = vadd.f32 %v2572_v2, %v321_v31  ;;  %v2660_v7 = vmul.f32 %v2126_v36, %v2586_v23  ;;  %v697_v25 = vsel %vm68_vm0, %v609_v40, 0.0 }
 0x106   :  { %v2130_v4 = vpop.eup %2129  ;;  %2143 = vtanh.f32 %v509_v49  ;;  %v2663_v35 = vmul.f32 %v2128_v20, %v2586_v23 }
 0x107   :  { %2145 = vtanh.f32 %v508_v28  ;;  %v1907_v1 = vpop.f32.mrb[20].mxu0  ;;  %v588_v45 = vmul.f32 %v2130_v4, %v2586_v23 }
 0x108   :  { %v2132_v59 = vpop.eup %2131  ;;  %626 = vadd.xlane.f32.xlu1 %v625_v19  ;;  %2147 = vtanh.f32 %v499_v58  ;;  %v511_v24 = vadd.f32 %v1907_v1, %v2572_v2  ;;  %v331_v13 = vpop.f32.mrb[21].mxu0 }
 0x109   :  { %v2134_v41 = vpop.eup %2133  ;;  %718 = vadd.xlane.f32.xlu0 %v717_v54  ;;  %v510_v63 = vadd.f32 %v2572_v2, %v331_v13  ;;  %v596_v3 = vmul.f32 %v2132_v59, %v2586_v23  ;;  %v634_v20 = vsel %vm68_vm0, %v588_v45, 0.0 }
 0x10a   :  { %v2136_v62 = vpop.eup %2135  ;;  %2149 = vtanh.f32 %v511_v24  ;;  %v2672_v16 = vmul.f32 %v2134_v41, %v2586_v23 }
 0x10b   :  { %2151 = vtanh.f32 %v510_v63  ;;  %v1910_v36 = vpop.f32.mrb[22].mxu0  ;;  %v587_v19 = vmul.f32 %v2136_v62, %v2586_v23  ;;  %v2195_v62 = vmov 0  }
 0x10c   :  { %v2138_v14 = vpop.eup %2137  ;;  %698 = vadd.xlane.f32.xlu1 %v697_v25  ;;  %v513_v58 = vadd.f32 %v1910_v36, %v2572_v2  ;;  %v341_v49 = vpop.f32.mrb[23].mxu0  ;;  %2088 = vset.pattern.permute.xlu0 %v2195_v62 }
 0x10d   :  { %v2140_v31 = vpop.eup %2139  ;;  %v512_v28 = vadd.f32 %v2572_v2, %v341_v49  ;;  %v598_v4 = vmul.f32 %v2138_v14, %v2586_v23  ;;  %v631_v24 = vsel %vm68_vm0, %v587_v19, 0.0  ;;  %2087 = vset.pattern.permute.xlu1 %v2195_v62 }
 0x10e   :  { %2153 = vtanh.f32 %v513_v58  ;;  %v597_v1 = vmul.f32 %v2140_v31, %v2586_v23  ;;  %v2142_v40 = vpop.eup %2141 }
 0x10f   :  { %2155 = vtanh.f32 %v512_v28  ;;  %v611_v63 = vmul.f32 %v2142_v40, %v2586_v23 }
 0x110   :  { %v2144_v59 = vpop.eup %2143  ;;  %635 = vadd.xlane.f32.xlu1 %v634_v20 }
 0x111   :  { %v2146_v54 = vpop.eup %2145  ;;  %v600_v13 = vmul.f32 %v2144_v59, %v2586_v23  ;;  %v703_v49 = vsel %vm68_vm0, %v611_v63, 0.0  ;;  %v646_v59 = vsel %vm68_vm0, %v2647_v0, 0.0  ;;  %v643_v0 = vsel %vm68_vm0, %v2652_v12, 0.0  ;;  %v1305_v12 = vpop.permute.xlu1 %1304 }
 0x112   :  { %v2148_v41 = vpop.eup %2147  ;;  %v599_v45 = vmul.f32 %v2146_v54, %v2586_v23  ;;  %v652_v54 = vsel %vm68_vm0, %v2660_v7, 0.0 }
 0x113   :  { %v590_v36 = vmul.f32 %v2148_v41, %v2586_v23  ;;  %v664_v41 = vsel %vm68_vm0, %v598_v4, 0.0  ;;  %v655_v4 = vsel %vm68_vm0, %v2672_v16, 0.0 }
 0x114   :  { %v2150_v2 = vpop.eup %2149  ;;  %632 = vadd.xlane.f32.xlu1 %v631_v24  ;;  %v658_v24 = vsel %vm68_vm0, %v596_v3, 0.0  ;;  %v649_v3 = vsel %vm68_vm0, %v2663_v35, 0.0 }
 0x115   :  { %v2152_v25 = vpop.eup %2151  ;;  %v602_v14 = vmul.f32 %v2150_v2, %v2586_v23  ;;  %v640_v19 = vsel %vm68_vm0, %v590_v36, 0.0  ;;  %v637_v2 = vsel %vm68_vm0, %v2641_v60, 0.0  ;;  %v667_v60 = vsel %vm68_vm0, %v599_v45, 0.0  ;;  %v1308_v35 = vpop.permute.xlu1 %1307 }
 0x116   :  { %v601_v58 = vmul.f32 %v2152_v25, %v2586_v23  ;;  %v741_v25 = vpop.permute.xlu0 %740 }
 0x117   :  { %v676_v63 = vsel %vm68_vm0, %v602_v14, 0.0 }
 0x118   :  { %v2154_v31 = vpop.eup %2153  ;;  %704 = vadd.xlane.f32.xlu1 %v703_v49  ;;  %v673_v62 = vsel %vm68_vm0, %v601_v58, 0.0 }
 0x119   :  { %v2156_v20 = vpop.eup %2155  ;;  %v604_v28 = vmul.f32 %v2154_v31, %v2586_v23  ;;  %v737_v49 = vpop.permute.xlu1 %736 }
 0x11a   :  { %v603_v40 = vmul.f32 %v2156_v20, %v2586_v23  ;;  %v670_v23 = vsel %vm68_vm0, %v600_v13, 0.0  ;;  %v661_v13 = vsel %vm68_vm0, %v597_v1, 0.0  ;;  %v753_v14 = vpop.permute.xlu0 %752 }
 0x11b   :  { %v682_v7 = vsel %vm68_vm0, %v604_v28, 0.0 }
 0x11c   :  { %641 = vadd.xlane.f32.xlu1 %v640_v19  ;;  %v679_v36 = vsel %vm68_vm0, %v603_v40, 0.0 }
 0x11d   :  { %v745_v16 = vpop.permute.xlu1 %744 }
 0x11e   :  { %v761_v31 = vpop.permute.xlu0 %760 }
 0x11f   :  { %776 = vbcast.lane.b32.xlu0 %v2497_v61, 336 }
 0x121   :  { %v749_v1 = vpop.permute.xlu1 %748 }
 0x122   :  { %v2715_v20 = vpop.permute.xlu0 %768 }
 0x125   :  { %v757_v28 = vpop.permute.xlu1 %756 }
 0x129   :  { %v765_v58 = vpop.permute.xlu1 %764 }
 0x12d   :  { %780 = vbcast.lane.b32.xlu1 %v2497_v61, 344  ;;  %v2725_v40 = vpop.permute.xlu1 %772 }
 0x13e   :  { %647 = vadd.xlane.f32.xlu0 %v646_v59 }
 0x142   :  { %653 = vadd.xlane.f32.xlu0 %v652_v54 }
 0x146   :  { %659 = vadd.xlane.f32.xlu0 %v658_v24 }
 0x14a   :  { %665 = vadd.xlane.f32.xlu0 %v664_v41 }
 0x14e   :  { %671 = vadd.xlane.f32.xlu0 %v670_v23 }
 0x151   :  { %638 = vadd.xlane.f32.xlu1 %v637_v2 }
 0x152   :  { %677 = vadd.xlane.f32.xlu0 %v676_v63 }
 0x155   :  { %644 = vadd.xlane.f32.xlu1 %v643_v0 }
 0x156   :  { %683 = vadd.xlane.f32.xlu0 %v682_v7 }
 0x159   :  { %650 = vadd.xlane.f32.xlu1 %v649_v3  ;;  %v1788_v3 = vld [vmem:[%s3042_s4 + $0x1] ss:$0 sm:$0xff]  ;;  %s2200_s4 = smov 16  }
 0x15d   :  { %656 = vadd.xlane.f32.xlu1 %v655_v4 }
 0x161   :  { %662 = vadd.xlane.f32.xlu1 %v661_v13 }
 0x165   :  { %668 = vadd.xlane.f32.xlu1 %v667_v60 }
 0x169   :  { %674 = vadd.xlane.f32.xlu1 %v673_v62 }
 0x16d   :  { %680 = vadd.xlane.f32.xlu1 %v679_v36 }
 0x17d   :  { %v618_v63 = vpop.xlane.xlu1 %617 }
 0x17e   :  { %v2717_v19 = vpop.xlane.xlu0 %689 }
 0x181   :  { %v615_v7 = vpop.xlane.xlu1 %614 }
 0x182   :  { %v2719_v45 = vpop.xlane.xlu0 %695  ;;  %v893_v36 = vadd.f32 %v737_v49, %v615_v7 }
 0x185   :  { %v2739_v4 = vpop.xlane.xlu1 %686 }
 0x186   :  { %v621_v59 = vpop.xlane.xlu0 %620 }
 0x187   :  { %v895_v8 = vadd.f32 %v745_v16, %v621_v59 }
 0x189   :  { %v624_v13 = vpop.xlane.xlu1 %623 }
 0x18a   :  { %v2721_v54 = vpop.xlane.xlu0 %701  ;;  %v896_v26 = vadd.f32 %v749_v1, %v624_v13 }
 0x18d   :  { %v2742_v60 = vpop.xlane.xlu1 %692 }
 0x18e   :  { %v2723_v24 = vpop.xlane.xlu0 %707 }
 0x192   :  { %v722_v41 = vpop.xlane.xlu0 %721 }
 0x193   :  { %v2727_v23 = vadd.f32 %v1308_v35, %v722_v41  ;;  %v894_v35 = vadd.f32 %v741_v25, %v618_v63 }
 0x195   :  { %1319 = vperm.xlu1 %2087, %v2727_v23  }
 0x196   :  { %v719_v2 = vpop.xlane.xlu0 %718 }
 0x197   :  { %v2730_v0 = vadd.f32 %v1305_v12, %v719_v2  ;;  %v630_v12 = vpop.xlane.xlu1 %629 }
 0x198   :  { %v898_v27 = vadd.f32 %v757_v28, %v630_v12 }
 0x199   :  { %1316 = vperm.xlu0 %2088, %v2730_v0   ;;  %788 = vbcast.lane.b32.xlu1 %v2497_v61, 360 }
 0x19b   :  { %v627_v62 = vpop.xlane.xlu1 %626 }
 0x19c   :  { %v897_v41 = vadd.f32 %v753_v14, %v627_v62 }
 0x19d   :  { %784 = vbcast.lane.b32.xlu0 %v2497_v61, 352  ;;  %796 = vbcast.lane.b32.xlu1 %v2497_v61, 376 }
 0x1a1   :  { %792 = vbcast.lane.b32.xlu0 %v2497_v61, 368  ;;  %803 = vbcast.lane.b32.xlu1 %v1788_v3, 264  ;;  %v2744_v61 = vpop.xlane.xlu1 %698 }
 0x1a5   :  { %799 = vbcast.lane.b32.xlu0 %v1788_v3, 256  ;;  %811 = vbcast.lane.b32.xlu1 %v1788_v3, 280  ;;  %v636_v2 = vpop.xlane.xlu1 %635 }
 0x1a6   :  { %v900_v49 = vadd.f32 %v765_v58, %v636_v2 }
 0x1a9   :  { %807 = vbcast.lane.b32.xlu0 %v1788_v3, 272  ;;  %819 = vbcast.lane.b32.xlu1 %v1788_v3, 296  ;;  %v633_v50 = vpop.xlane.xlu1 %632 }
 0x1aa   :  { %v899_v46 = vadd.f32 %v761_v31, %v633_v50 }
 0x1ad   :  { %815 = vbcast.lane.b32.xlu0 %v1788_v3, 288  ;;  %827 = vbcast.lane.b32.xlu1 %v1788_v3, 312  ;;  %v2746_v44 = vpop.xlane.xlu1 %704 }
 0x1b1   :  { %823 = vbcast.lane.b32.xlu0 %v1788_v3, 304  ;;  %835 = vbcast.lane.b32.xlu1 %v1788_v3, 328  ;;  %v2748_v21 = vpop.xlane.xlu1 %641 }
 0x1b5   :  { %831 = vbcast.lane.b32.xlu0 %v1788_v3, 320  ;;  %843 = vbcast.lane.b32.xlu1 %v1788_v3, 344  ;;  %v2750_v25 = vpop.permute.xlu1 %780 }
 0x1b9   :  { %839 = vbcast.lane.b32.xlu0 %v1788_v3, 336  ;;  %851 = vbcast.lane.b32.xlu1 %v1788_v3, 360 }
 0x1bd   :  { %847 = vbcast.lane.b32.xlu0 %v1788_v3, 352  ;;  %859 = vbcast.lane.b32.xlu1 %v1788_v3, 376 }
 0x1c1   :  { %855 = vbcast.lane.b32.xlu0 %v1788_v3, 368  ;;  %958 = vperm.xlu1 %2087, %v893_v36  }
 0x1c5   :  { %982 = vperm.xlu0 %2088, %v897_v41   ;;  %961 = vperm.xlu1 %2087, %v894_v35  }
 0x1c9   :  { %970 = vperm.xlu1 %2087, %v895_v8   ;;  %v777_v8 = vpop.permute.xlu0 %776 }
 0x1cd   :  { %973 = vperm.xlu1 %2087, %v896_v26   ;;  %v2755_v26 = vpop.xlane.xlu0 %647 }
 0x1d1   :  { %985 = vperm.xlu1 %2087, %v898_v27   ;;  %v2757_v28 = vpop.xlane.xlu0 %653 }
 0x1d5   :  { %994 = vperm.xlu1 %2087, %v899_v46   ;;  %v2761_v46 = vpop.xlane.xlu0 %659 }
 0x1d9   :  { %997 = vperm.xlu1 %2087, %v900_v49   ;;  %v666_v31 = vpop.xlane.xlu0 %665 }
 0x1dd   :  { %v672_v58 = vpop.xlane.xlu0 %671 }
 0x1de   :  { %v639_v14 = vpop.xlane.xlu1 %638 }
 0x1df   :  { %v901_v63 = vadd.f32 %v2715_v20, %v639_v14 }
 0x1e1   :  { %1006 = vperm.xlu1 %2087, %v901_v63   ;;  %v678_v3 = vpop.xlane.xlu0 %677 }
 0x1e2   :  { %v645_v16 = vpop.xlane.xlu1 %644 }
 0x1e5   :  { %v684_v13 = vpop.xlane.xlu0 %683 }
 0x1e6   :  { %v2753_v1 = vpop.xlane.xlu1 %650 }
 0x1ea   :  { %v2759_v27 = vpop.xlane.xlu1 %656 }
 0x1ee   :  { %v663_v50 = vpop.xlane.xlu1 %662 }
 0x1f2   :  { %v669_v59 = vpop.xlane.xlu1 %668 }
 0x1f6   :  { %v675_v7 = vpop.xlane.xlu1 %674 }
 0x1fa   :  { %v681_v20 = vpop.xlane.xlu1 %680 }
 0x214   :  { %v1320_v12 = vpop.permute.xlu1 %1319 }
 0x218   :  { %v1317_v62 = vpop.permute.xlu0 %1316  ;;  %v2763_v36 = vpop.permute.xlu1 %788 }
 0x21c   :  { %v785_v35 = vpop.permute.xlu0 %784  ;;  %v2765_v41 = vpop.permute.xlu1 %796 }
 0x220   :  { %v2767_v2 = vpop.permute.xlu0 %792  ;;  %v804_v49 = vpop.permute.xlu1 %803 }
 0x221   :  { %v910_v14 = vadd.f32 %v804_v49, %v666_v31 }
 0x223   :  { %967 = vperm.xlu1 %2087, %v910_v14   ;;  %v1053_v14 = vlaneseq }
 0x224   :  { %v800_v63 = vpop.permute.xlu0 %799  ;;  %v812_v22 = vpop.permute.xlu1 %811 }
 0x225   :  { %v909_v42 = vadd.f32 %v800_v63, %v663_v50  ;;  %v912_v15 = vadd.f32 %v812_v22, %v672_v58  ;;  %v1054_v22 = vand.u32 127, %v1053_v14  ;;  %vm3000_vm11 = vcmp.lt.s32.totalorder %v1053_v14, 128 }
 0x226   :  { %vm1722_vm12 = vcmp.ge.s32.totalorder %v1053_v14, 32  ;;  %vm1718_vm13 = vcmp.lt.s32.totalorder %v1053_v14, 32 }
 0x227   :  { %964 = vperm.xlu1 %2087, %v909_v42   ;;  %vm1723_vm14 = vmand %vm1722_vm12, %vm3000_vm11 }
 0x228   :  { %v808_v43 = vpop.permute.xlu0 %807  ;;  %v820_v11 = vpop.permute.xlu1 %819 }
 0x229   :  { %v911_v39 = vadd.f32 %v808_v43, %v669_v59  ;;  %v914_v10 = vadd.f32 %v820_v11, %v678_v3  ;;  %v1059_v43 = vadd.s32 4294967288, %v1054_v22  ;;  %v903_v11 = vadd.f32 %v777_v8, %v645_v16 }
 0x22b   :  { %979 = vperm.xlu1 %2087, %v912_v15  }
 0x22c   :  { %v828_v38 = vpop.permute.xlu1 %827  ;;  %v816_v37 = vpop.permute.xlu0 %815 }
 0x22d   :  { %v916_v34 = vadd.f32 %v828_v38, %v684_v13  ;;  %v913_v49 = vadd.f32 %v816_v37, %v675_v7  ;;  %v905_v13 = vadd.f32 %v785_v35, %v2753_v1  ;;  %v907_v1 = vadd.f32 %v2767_v2, %v2759_v27 }
 0x22e   :  { %v906_v27 = vadd.f32 %v2763_v36, %v2757_v28 }
 0x22f   :  { %976 = vperm.xlu1 %2087, %v911_v39   ;;  %1003 = vperm.xlu0 %2088, %v916_v34   ;;  %v2772_v34 = vshrl.u32 %v1053_v14, 7 }
 0x230   :  { %v836_v9 = vpop.permute.xlu1 %835  ;;  %v824_v32 = vpop.permute.xlu0 %823 }
 0x231   :  { %v915_v42 = vadd.f32 %v824_v32, %v681_v20  ;;  %v2775_v37 = vsub.s32 %v1059_v43, %v2772_v34  ;;  %v2778_v32 = vsub.s32 %v1054_v22, %v2772_v34 }
 0x233   :  { %991 = vperm.xlu1 %2087, %v914_v10   ;;  %v1324_v3 = vrot.slane %v1317_v62, %v2778_v32  ;;  %v1328_v16 = vrot.slane %v1320_v12, %v2778_v32 }
 0x234   :  { %v844_v31 = vpop.permute.xlu1 %843  ;;  %v832_v63 = vpop.permute.xlu0 %831 }
 0x235   :  { %v917_v38 = vadd.f32 %v832_v63, %v2739_v4 }
 0x237   :  { %988 = vperm.xlu1 %2087, %v913_v49  }
 0x238   :  { %v852_v50 = vpop.permute.xlu1 %851  ;;  %v840_v39 = vpop.permute.xlu0 %839 }
 0x239   :  { %v919_v58 = vadd.f32 %v840_v39, %v2742_v60  ;;  %v920_v39 = vadd.f32 %v844_v31, %v2719_v45 }
 0x23b   :  { %1000 = vperm.xlu1 %2087, %v915_v42   ;;  %v1329_v42 = vsel %vm1201_vm2, %v1328_v16, %v1324_v3 }
 0x23c   :  { %v860_v15 = vpop.permute.xlu1 %859  ;;  %v848_v49 = vpop.permute.xlu0 %847 }
 0x23d   :  { %v921_v63 = vadd.f32 %v848_v49, %v2744_v61  ;;  %v902_v61 = vadd.f32 %v2725_v40, %v2748_v21  ;;  %v908_v21 = vadd.f32 %v2765_v41, %v2761_v46 }
 0x23f   :  { %1012 = vperm.xlu1 %2087, %v917_v38   ;;  %v1332_v38 = vsel %vm1331_vm3, %v1329_v42, -inf }
 0x240   :  { %v959_v10 = vpop.permute.xlu1 %958  ;;  %v856_v35 = vpop.permute.xlu0 %855 }
 0x241   :  { %v1058_v4 = vrot.slane %v959_v10, %v2778_v32  ;;  %v923_v43 = vadd.f32 %v856_v35, %v2746_v44  ;;  %v918_v10 = vadd.f32 %v836_v9, %v2717_v19  ;;  %v922_v44 = vadd.f32 %v852_v50, %v2721_v54 }
 0x242   :  { %v924_v9 = vadd.f32 %v860_v15, %v2723_v24  ;;  %v2196_v50 = vmov 1983009808  }
 0x243   :  { %1018 = vperm.xlu1 %2087, %v903_v11   ;;  %v904_v11 = vadd.f32 %v2750_v25, %v2755_v26 }
 0x244   :  { %v962_v59 = vpop.permute.xlu1 %961 }
 0x245   :  { %v1063_v7 = vrot.slane %v962_v59, %v2775_v37  ;;  %v983_v59 = vpop.permute.xlu0 %982 }
 0x246   :  { %v1096_v41 = vrot.slane %v983_v59, %v2778_v32 }
 0x247   :  { %v2785_v8 = vsel %vm1064_vm1, %v1063_v7, %v1058_v4  ;;  %1024 = vperm.xlu1 %2087, %v919_v58   ;;  %v1220_v58 = vunpack.c.l.s4 %v2196_v50 }
 0x248   :  { %v971_v20 = vpop.permute.xlu1 %970 }
 0x249   :  { %v1078_v62 = vrot.slane %v971_v20, %v2778_v32 }
 0x24b   :  { %1030 = vperm.xlu1 %2087, %v905_v13   ;;  %v1221_v13 = vunpack.c.0.s8 %v1220_v58 }
 0x24c   :  { %v974_v60 = vpop.permute.xlu1 %973 }
 0x24d   :  { %v1082_v22 = vrot.slane %v974_v60, %v2775_v37 }
 0x24e   :  { %1333 = vmax.xlane.f32.xlu0 %v1332_v38 }
 0x24f   :  { %v1083_v12 = vsel %vm1064_vm1, %v1082_v22, %v1078_v62  ;;  %1036 = vperm.xlu1 %2087, %v921_v63  }
 0x250   :  { %v986_v19 = vpop.permute.xlu1 %985 }
 0x251   :  { %v1100_v46 = vrot.slane %v986_v19, %v2775_v37 }
 0x253   :  { %1042 = vperm.xlu1 %2087, %v907_v1   ;;  %v1101_v49 = vsel %vm1064_vm1, %v1100_v46, %v1096_v41 }
 0x254   :  { %v995_v40 = vpop.permute.xlu1 %994 }
 0x255   :  { %v1114_v62 = vrot.slane %v995_v40, %v2778_v32 }
 0x257   :  { %1048 = vperm.xlu1 %2087, %v923_v43  }
 0x258   :  { %v998_v25 = vpop.permute.xlu1 %997 }
 0x259   :  { %v1118_v42 = vrot.slane %v998_v25, %v2775_v37  ;;  %v1338_v25 = vsub.s32 0, %v2772_v34 }
 0x260   :  { %v2810_v26 = vpop.permute.xlu1 %1006 }
 0x264   :  { %1009 = vperm.xlu0 %2088, %v902_v61  }
 0x268   :  { %1015 = vperm.xlu0 %2088, %v918_v10  }
 0x26c   :  { %1021 = vperm.xlu0 %2088, %v904_v11   ;;  %v1119_v11 = vsel %vm1064_vm1, %v1118_v42, %v1114_v62 }
 0x270   :  { %1027 = vperm.xlu0 %2088, %v920_v39  }
 0x274   :  { %1033 = vperm.xlu0 %2088, %v906_v27   ;;  %v2834_v27 = vsub.s32 %v1221_v13, %v2772_v34 }
 0x278   :  { %1039 = vperm.xlu0 %2088, %v922_v44  }
 0x27c   :  { %1045 = vperm.xlu0 %2088, %v908_v21  }
 0x280   :  { %1051 = vperm.xlu0 %2088, %v924_v9  }
 0x2a2   :  { %v968_v45 = vpop.permute.xlu1 %967 }
 0x2a3   :  { %v1073_v24 = vrot.slane %v968_v45, %v2775_v37  ;;  %v1342_v45 = vsub.s32 1, %v2772_v34 }
 0x2a6   :  { %v965_v2 = vpop.permute.xlu1 %964 }
 0x2a7   :  { %v1069_v54 = vrot.slane %v965_v2, %v2778_v32 }
 0x2a9   :  { %v1074_v4 = vsel %vm1064_vm1, %v1073_v24, %v1069_v54 }
 0x2aa   :  { %v980_v31 = vpop.permute.xlu1 %979  ;;  %v1202_v22 = vsel %vm1201_vm2, %v1074_v4, %v2785_v8 }
 0x2ab   :  { %v1091_v60 = vrot.slane %v980_v31, %v2775_v37 }
 0x2ae   :  { %v977_v28 = vpop.permute.xlu1 %976  ;;  %v1004_v20 = vpop.permute.xlu0 %1003 }
 0x2af   :  { %v1087_v7 = vrot.slane %v977_v28, %v2778_v32  ;;  %v1127_v35 = vrot.slane %v1004_v20, %v2775_v37 }
 0x2b1   :  { %v1092_v43 = vsel %vm1064_vm1, %v1091_v60, %v1087_v7 }
 0x2b2   :  { %v992_v36 = vpop.permute.xlu1 %991  ;;  %v1203_v44 = vsel %vm1201_vm2, %v1092_v43, %v1083_v12 }
 0x2b3   :  { %v1109_v3 = vrot.slane %v992_v36, %v2775_v37 }
 0x2b6   :  { %v989_v15 = vpop.permute.xlu1 %988 }
 0x2b7   :  { %v1105_v16 = vrot.slane %v989_v15, %v2778_v32 }
 0x2b9   :  { %v1110_v63 = vsel %vm1064_vm1, %v1109_v3, %v1105_v16 }
 0x2ba   :  { %v1204_v38 = vsel %vm1201_vm2, %v1110_v63, %v1101_v49  ;;  %v1001_v1 = vpop.permute.xlu1 %1000 }
 0x2bb   :  { %v1218_v61 = vcombine.low %v1202_v22, %v1204_v38  ;;  %v1123_v10 = vrot.slane %v1001_v1, %v2778_v32 }
 0x2bd   :  { %v1128_v39 = vsel %vm1064_vm1, %v1127_v35, %v1123_v10  ;;  %v2839_v9 = vrot.slane %v1218_v61, %v2834_v27  ;;  %v1132_v61 = vrot.slane %v2810_v26, %v2778_v32 }
 0x2be   :  { %v1205_v8 = vsel %vm1201_vm2, %v1128_v39, %v1119_v11  ;;  %v1013_v2 = vpop.permute.xlu1 %1012  ;;  %v2197_v39 = vmov 1934713408  }
 0x2bf   :  { %v1226_v21 = vcombine.low %v1203_v44, %v1205_v8  ;;  %v1141_v62 = vrot.slane %v1013_v2, %v2778_v32  ;;  %v1252_v44 = vunpack.c.l.s4 %v2197_v39 }
 0x2c1   :  { %v2842_v19 = vrot.slane %v1226_v21, %v2834_v27 }
 0x2c2   :  { %v1019_v54 = vpop.permute.xlu1 %1018 }
 0x2c3   :  { %v1250_v40 = vcombine.low %v2839_v9, %v2842_v19 }
 0x2c6   :  { %v1025_v24 = vpop.permute.xlu1 %1024 }
 0x2c7   :  { %v1159_v10 = vrot.slane %v1025_v24, %v2778_v32 }
 0x2ca   :  { %v1031_v15 = vpop.permute.xlu1 %1030 }
 0x2cb   :  { %v1168_v38 = vrot.slane %v1031_v15, %v2778_v32 }
 0x2db   :  { %v1334_v31 = vpop.xlane.xlu0 %1333 }
 0x2dc   :  { %v1339_v12 = vrot.slane %v1334_v31, %v1338_v25  ;;  %v1343_v28 = vrot.slane %v1334_v31, %v1342_v45 }
 0x2de   :  { %v1346_v36 = vsub.f32 %v2730_v0, %v1339_v12  ;;  %v1347_v59 = vsub.f32 %v2727_v23, %v1343_v28  ;;  %v1037_v23 = vpop.permute.xlu1 %1036  ;;  %v1150_v12 = vrot.slane %v1019_v54, %v2778_v32 }
 0x2df   :  { %v1177_v42 = vrot.slane %v1037_v23, %v2778_v32 }
 0x2e0   :  { %v1348_v50 = vmul.f32 1.442695, %v1346_v36  ;;  %v1350_v58 = vmul.f32 1.442695, %v1347_v59 }
 0x2e2   :  { %2157 = vpow2.f32 %v1348_v50  ;;  %v1043_v20 = vpop.permute.xlu1 %1042 }
 0x2e3   :  { %2159 = vpow2.f32 %v1350_v58  ;;  %v1010_v46 = vpop.permute.xlu0 %1009  ;;  %v1186_v28 = vrot.slane %v1043_v20, %v2778_v32 }
 0x2e4   :  { %v1136_v1 = vrot.slane %v1010_v46, %v2775_v37 }
 0x2e6   :  { %v1049_v11 = vpop.permute.xlu1 %1048  ;;  %v1137_v50 = vsel %vm1064_vm1, %v1136_v1, %v1132_v61 }
 0x2e7   :  { %v1016_v41 = vpop.permute.xlu0 %1015  ;;  %v1195_v59 = vrot.slane %v1049_v11, %v2778_v32 }
 0x2e8   :  { %v1145_v60 = vrot.slane %v1016_v41, %v2775_v37  ;;  %v1253_v41 = vunpack.c.0.s8 %v1252_v44 }
 0x2ea   :  { %v1146_v8 = vsel %vm1064_vm1, %v1145_v60, %v1141_v62 }
 0x2eb   :  { %v1022_v4 = vpop.permute.xlu0 %1021  ;;  %v1206_v24 = vsel %vm1201_vm2, %v1146_v8, %v1137_v50 }
 0x2ec   :  { %v2854_v7 = vpop.eup %2157  ;;  %v1154_v21 = vrot.slane %v1022_v4, %v2775_v37 }
 0x2ed   :  { %v2856_v3 = vpop.eup %2159  ;;  %1355 = vperm.xlu1 %2087, %v2854_v7  }
 0x2ee   :  { %1358 = vperm.xlu0 %2088, %v2856_v3   ;;  %v1155_v15 = vsel %vm1064_vm1, %v1154_v21, %v1150_v12 }
 0x2ef   :  { %v1028_v0 = vpop.permute.xlu0 %1027 }
 0x2f0   :  { %v1163_v35 = vrot.slane %v1028_v0, %v2775_v37 }
 0x2f2   :  { %v1164_v58 = vsel %vm1064_vm1, %v1163_v35, %v1159_v10 }
 0x2f3   :  { %v1034_v16 = vpop.permute.xlu0 %1033  ;;  %v1207_v23 = vsel %vm1201_vm2, %v1164_v58, %v1155_v15  ;;  %v3103_v15 = vld [vmem:[#allocation18_spill] sm:$0xff] }
 0x2f4   :  { %v1172_v63 = vrot.slane %v1034_v16, %v2775_v37 }
 0x2f6   :  { %v1173_v2 = vsel %vm1064_vm1, %v1172_v63, %v1168_v38 }
 0x2f7   :  { %v1040_v13 = vpop.permute.xlu0 %1039 }
 0x2f8   :  { %v1181_v49 = vrot.slane %v1040_v13, %v2775_v37 }
 0x2fa   :  { %v1182_v43 = vsel %vm1064_vm1, %v1181_v49, %v1177_v42 }
 0x2fb   :  { %v1046_v22 = vpop.permute.xlu0 %1045  ;;  %v1208_v36 = vsel %vm1201_vm2, %v1182_v43, %v1173_v2 }
 0x2fc   :  { %v1190_v31 = vrot.slane %v1046_v22, %v2775_v37  ;;  %v1234_v4 = vcombine.low %v1206_v24, %v1208_v36  ;;  %v3081_v24 = vpack.c.bf16 %v2437_v48, %v2432_v47  ;;  %v3085_v47 = vpack.c.bf16 %v2467_v55, %v2458_v53  ;;  %v3088_v48 = vld [vmem:[#allocation13_spill] sm:$0xff]  ;;  %v3093_v53 = vld [vmem:[#allocation15_spill] sm:$0xff]  ;;  %v3094_v55 = vld [vmem:[#allocation14_spill] sm:$0xff] }
 0x2fe   :  { %v1191_v54 = vsel %vm1064_vm1, %v1190_v31, %v1186_v28  ;;  %v1241_v13 = vrot.slane %v1234_v4, %v2834_v27 }
 0x2ff   :  { %v1052_v26 = vpop.permute.xlu0 %1051 }
 0x300   :  { %v1199_v46 = vrot.slane %v1052_v26, %v2775_v37  ;;  %v2892_v37 = vsub.s32 %v1253_v41, %v2772_v34  ;;  %v3082_v41 = vpack.c.bf16 %v2275_v6, %v2270_v5  ;;  %v3083_v34 = vpack.c.bf16 %v2453_v52, %v2448_v51  ;;  %v3091_v51 = vld [vmem:[#allocation5_spill] sm:$0xff] }
 0x301   :  { %v3086_v5 = vpack.c.bf16 %v2363_v30, %v2358_v29  ;;  %v3087_v6 = vpack.c.bf16 %v2477_v57, %v2472_v56  ;;  %v3095_v29 = vpack.c.bf16 %v3093_v53, %v3094_v55  ;;  %v3096_v30 = vld [vmem:[#allocation17_spill] sm:$0xff]  ;;  %v3099_v57 = vld [vmem:[#allocation8_spill] sm:$0xff] }
 0x302   :  { %v1200_v0 = vsel %vm1064_vm1, %v1199_v46, %v1195_v59  ;;  %v1257_v60 = vrot.slane %v1250_v40, %v2892_v37  ;;  %v2198_v46 = vmov 0.0|0.0  }
 0x303   :  { %v1209_v16 = vsel %vm1201_vm2, %v1200_v0, %v1191_v54  ;;  %2044 = vmatprep.subr.bf16.mxu0 %v2198_v46  ;;  %2020 = vmatprep.subr.bf16.mxu1 %v2198_v46  ;;  %v3105_v54 = vld [vmem:[#allocation10_spill] sm:$0xff]  ;;  %v3106_v0 = vld [vmem:[#allocation9_spill] sm:$0xff] }
 0x304   :  { %v1242_v20 = vcombine.low %v1207_v23, %v1209_v16  ;;  %2046 = vmatpush3.bf16.msra.mxu0 %v3081_v24  ;;  %2022 = vmatpush3.bf16.msra.mxu1 %v3082_v41  ;;  %v3107_v23 = vpack.c.bf16 %v3105_v54, %v3106_v0  ;;  %v3108_v16 = vld [vmem:[#allocation21_spill] sm:$0xff] }
 0x305   :  { %2047 = vmatprep.subr.bf16.mxu0 %v2198_v46  ;;  %2023 = vmatprep.subr.bf16.mxu1 %v2198_v46 }
 0x306   :  { %v1249_v49 = vrot.slane %v1242_v20, %v2834_v27  ;;  %v3109_v20 = vld [vmem:[#allocation20_spill] sm:$0xff] }
 0x308   :  { %v1258_v42 = vcombine.low %v1241_v13, %v1249_v49  ;;  %2049 = vmatpush3.bf16.msra.mxu0 %v3083_v34  ;;  %v3110_v13 = vpack.c.bf16 %v3108_v16, %v3109_v20  ;;  %v3111_v49 = vld [vmem:[#allocation12_spill] sm:$0xff] }
 0x309   :  { %2050 = vmatprep.subr.bf16.mxu0 %v2198_v46 }
 0x30a   :  { %v1265_v63 = vrot.slane %v1258_v42, %v2892_v37  ;;  %v3112_v42 = vld [vmem:[#allocation11_spill] sm:$0xff] }
 0x30c   :  { %v1267_v62 = vcombine.high %v1257_v60, %v1265_v63  ;;  %v1266_v22 = vcombine.low %v1257_v60, %v1265_v63  ;;  %2052 = vmatpush3.bf16.msra.mxu0 %v3085_v47  ;;  %v3113_v60 = vpack.c.bf16 %v3111_v49, %v3112_v42 }
 0x30d   :  { %2053 = vmatprep.subr.bf16.mxu0 %v2198_v46 }
 0x30e   :  { %v1272_v38 = vsel %vm1268_vm4, %v1267_v62, -inf  ;;  %v1269_v1 = vsel %vm1268_vm4, %v1266_v22, -inf }
 0x30f   :  { %1273 = vmax.xlane.f32.xlu0 %v1272_v38 }
 0x310   :  { %2055 = vmatpush3.bf16.msra.mxu0 %v3087_v6 }
 0x311   :  { %1270 = vmax.xlane.f32.xlu1 %v1269_v1  ;;  %2056 = vmatprep.subr.bf16.mxu0 %v2198_v46 }
 0x36c   :  { %v1356_v35 = vpop.permute.xlu1 %1355 }
 0x36d   :  { %v1359_v43 = vpop.permute.xlu0 %1358  ;;  %v1363_v61 = vrot.slane %v1356_v35, %v2778_v32 }
 0x36e   :  { %v1367_v10 = vrot.slane %v1359_v43, %v2778_v32 }
 0x370   :  { %v1368_v9 = vsel %vm1201_vm2, %v1367_v10, %v1363_v61 }
 0x371   :  { %v1370_v19 = vsel %vm1331_vm3, %v1368_v9, 0.0 }
 0x372   :  { %1371 = vadd.xlane.f32.xlu0 %v1370_v19 }
 0x39c   :  { %v1274_v40 = vpop.xlane.xlu0 %1273 }
 0x39d   :  { %v1276_v11 = vsub.f32 %v1267_v62, %v1274_v40 }
 0x39e   :  { %v1271_v39 = vpop.xlane.xlu1 %1270 }
 0x39f   :  { %v1279_v44 = vmul.f32 1.442695, %v1276_v11  ;;  %v1275_v8 = vsub.f32 %v1266_v22, %v1271_v39  ;;  %v2199_v11 = vmov 0.0  }
 0x3a0   :  { %1966 = vmatprep.mubr.msk.f32.mxu1 %vm2203_vm5, %v2199_v11  ;;  %2001 = vmatprep.mubr.msk.f32.mxu0 %vm2203_vm5, %v2199_v11 }
 0x3a1   :  { %2161 = vpow2.f32 %v1279_v44  ;;  %v1277_v21 = vmul.f32 1.442695, %v1275_v8 }
 0x3a3   :  { %2163 = vpow2.f32 %v1277_v21 }
 0x3ab   :  { %v2162_v2 = vpop.eup %2161 }
 0x3ac   :  { %v1284_v31 = vsel %vm1268_vm4, %v2162_v2, 0.0 }
 0x3ad   :  { %v2164_v12 = vpop.eup %2163  ;;  %1285 = vadd.xlane.f32.xlu1 %v1284_v31 }
 0x3ae   :  { %v1281_v32 = vsel %vm1268_vm4, %v2164_v12, 0.0 }
 0x3af   :  { %1282 = vadd.xlane.f32.xlu0 %v1281_v32 }
 0x3ff   :  { %v1372_v28 = vpop.xlane.xlu0 %1371 }
 0x400   :  { %2165 = vrcp.f32 %v1372_v28 }
 0x40a   :  { %v2166_v36 = vpop.eup %2165 }
 0x40b   :  { %v1382_v26 = vrot.slane %v2166_v36, %v1342_v45  ;;  %v1378_v59 = vrot.slane %v2166_v36, %v1338_v25  ;;  %v3084_v25 = vpack.c.bf16 %v2319_v18, %v2314_v17  ;;  %v3089_v17 = vpack.c.bf16 %v2375_v33, %v3088_v48  ;;  %v3090_v18 = vld [vmem:[#allocation6_spill] sm:$0xff]  ;;  %v3097_v45 = vld [vmem:[#allocation16_spill] sm:$0xff] }
 0x40c   :  { %v3092_v52 = vpack.c.bf16 %v3090_v18, %v3091_v51  ;;  %v3098_v56 = vpack.c.bf16 %v3096_v30, %v3097_v45 }
 0x40d   :  { %v1386_v50 = vmul.f32 %v2856_v3, %v1382_v26  ;;  %v1385_v58 = vmul.f32 %v2854_v7, %v1378_v59  ;;  %2025 = vmatpush3.bf16.msra.mxu1 %v3084_v25  ;;  %v3100_v7 = vld [vmem:[#allocation7_spill] sm:$0xff] }
 0x40e   :  { %2026 = vmatprep.subr.bf16.mxu1 %v2198_v46  ;;  %2058 = vmatpush3.bf16.msra.mxu0 %v3092_v52  ;;  %v3101_v33 = vpack.c.bf16 %v3099_v57, %v3100_v7  ;;  %v3102_v3 = vld [vmem:[#allocation19_spill] sm:$0xff] }
 0x40f   :  { %1394 = vperm.xlu1 %2087, %v1386_v50   ;;  %1389 = vperm.xlu0 %2088, %v1385_v58   ;;  %v3104_v4 = vpack.c.bf16 %v3102_v3, %v3103_v15 }
 0x410   :  { %2059 = vmatprep.subr.bf16.mxu0 %v2198_v46 }
 0x411   :  { %2028 = vmatpush3.bf16.msra.mxu1 %v3086_v5 }
 0x412   :  { %2029 = vmatprep.subr.bf16.mxu1 %v2198_v46  ;;  %2061 = vmatpush3.bf16.msra.mxu0 %v3101_v33 }
 0x413   :  { %2062 = vmatprep.subr.bf16.mxu0 %v2198_v46 }
 0x415   :  { %2031 = vmatpush3.bf16.msra.mxu1 %v3089_v17 }
 0x416   :  { %2032 = vmatprep.subr.bf16.mxu1 %v2198_v46  ;;  %2064 = vmatpush3.bf16.msra.mxu0 %v3107_v23 }
 0x417   :  { %2065 = vmatprep.subr.bf16.mxu0 %v2198_v46 }
 0x419   :  { %2034 = vmatpush3.bf16.msra.mxu1 %v3095_v29 }
 0x41a   :  { %2035 = vmatprep.subr.bf16.mxu1 %v2198_v46  ;;  %2067 = vmatpush3.bf16.msra.mxu0 %v3113_v60 }
 0x41d   :  { %2037 = vmatpush3.bf16.msra.mxu1 %v3098_v56 }
 0x41e   :  { %2038 = vmatprep.subr.bf16.mxu1 %v2198_v46 }
 0x421   :  { %2040 = vmatpush3.bf16.msra.mxu1 %v3104_v4 }
 0x422   :  { %2041 = vmatprep.subr.bf16.mxu1 %v2198_v46 }
 0x425   :  { %2043 = vmatpush3.bf16.msra.mxu1 %v3110_v13 }
 0x43a   :  { %v1286_v63 = vpop.xlane.xlu1 %1285 }
 0x43b   :  { %2167 = vrcp.f32 %v1286_v63 }
 0x43c   :  { %v1283_v62 = vpop.xlane.xlu0 %1282 }
 0x43d   :  { %2169 = vrcp.f32 %v1283_v62 }
 0x445   :  { %v2168_v22 = vpop.eup %2167 }
 0x446   :  { %v1290_v35 = vmul.f32 %v2168_v22, %v2162_v2 }
 0x447   :  { %v2170_v38 = vpop.eup %2169 }
 0x448   :  { %v1289_v1 = vmul.f32 %v2170_v38, %v2164_v12 }
 0x48e   :  { %v1390_v43 = vpop.permute.xlu0 %1389  ;;  %v1395_v61 = vpop.permute.xlu1 %1394 }
 0x48f   :  { %v1397_v10 = vmul.f32 %v1390_v43, %v1289_v1  ;;  %v1398_v9 = vmul.f32 %v1395_v61, %v1290_v35 }
 0x491   :  { %v1406_v19 = vrot.slane %v1397_v10, %v2834_v27  ;;  %v1455_v40 = vrot.slane %v1398_v9, %v2834_v27  ;;  %v1399_v39 = vcombine.high %v1397_v10, %v2199_v11  ;;  %v1448_v32 = vcombine.high %v1398_v9, %v2199_v11 }
 0x493   :  { %v1414_v44 = vcombine.high %v1406_v19, %v2199_v11  ;;  %v1421_v8 = vrot.slane %v1406_v19, %v2892_v37  ;;  %v2968_v31 = vrot.slane %v1455_v40, %v2892_v37  ;;  %v1413_v2 = vrot.slane %v1399_v39, %v2834_v27 }
 0x494   :  { %v1463_v28 = vcombine.high %v1455_v40, %v2199_v11  ;;  %v1462_v59 = vrot.slane %v1448_v32, %v2834_v27 }
 0x495   :  { %v1444_v21 = vcombine.high %v1421_v8, %v2199_v11  ;;  %v1428_v12 = vrot.slane %v1414_v44, %v2892_v37  ;;  %v1493_v36 = vcombine.high %v2968_v31, %v2199_v11  ;;  %v1436_v26 = vrot.slane %v1413_v2, %v2892_v37 }
 0x496   :  { %v1477_v50 = vrot.slane %v1463_v28, %v2892_v37  ;;  %v1485_v46 = vrot.slane %v1462_v59, %v2892_v37  ;;  %v1429_v24 = vcombine.high %v1413_v2, %v2199_v11  ;;  %v1478_v25 = vcombine.high %v1462_v59, %v2199_v11 }
 0x497   :  { %1499 = vrot.lane.b32.xlu1 %v1444_v21, %s2200_s4  ;;  %1507 = vrot.lane.b32.xlu0 %v1428_v12, %s2201_s12  ;;  %v1445_v58 = vcombine.high %v1428_v12, %v2199_v11  ;;  %v1446_v41 = vcombine.high %v1436_v26, %v2199_v11 }
 0x498   :  { %v1494_v27 = vcombine.high %v1477_v50, %v2199_v11  ;;  %v1443_v34 = vrot.slane %v1429_v24, %v2892_v37  ;;  %v1495_v47 = vcombine.high %v1485_v46, %v2199_v11  ;;  %v1492_v6 = vrot.slane %v1478_v25, %v2892_v37 }
 0x49a   :  { %v1447_v5 = vcombine.high %v1443_v34, %v2199_v11  ;;  %v1496_v48 = vcombine.high %v1492_v6, %v2199_v11 }
 0x49b   :  { %1501 = vrot.lane.b32.xlu1 %v1493_v36, %s2200_s4  ;;  %1523 = vrot.lane.b32.xlu0 %v1436_v26, %s2202_s13 }
 0x49f   :  { %1509 = vrot.lane.b32.xlu1 %v1477_v50, %s2201_s12  ;;  %1515 = vrot.lane.b32.xlu0 %v1445_v58, %s2204_s14 }
 0x4a3   :  { %1525 = vrot.lane.b32.xlu1 %v1485_v46, %s2202_s13  ;;  %1531 = vrot.lane.b32.xlu0 %v1446_v41, %s2205_s15 }
 0x4a7   :  { %1517 = vrot.lane.b32.xlu1 %v1494_v27, %s2204_s14  ;;  %1539 = vrot.lane.b32.xlu0 %v1443_v34, %s2206_s16 }
 0x4ab   :  { %1533 = vrot.lane.b32.xlu1 %v1495_v47, %s2205_s15  ;;  %1547 = vrot.lane.b32.xlu0 %v1447_v5, %s2207_s17 }
 0x4af   :  { %1541 = vrot.lane.b32.xlu1 %v1492_v6, %s2206_s16 }
 0x4b3   :  { %1549 = vrot.lane.b32.xlu1 %v1496_v48, %s2207_s17 }
 0x509   :  { %v1500_v17 = vpop.permute.xlu1 %1499  ;;  %v1508_v18 = vpop.permute.xlu0 %1507 }
 0x50a   :  { %v1553_v29 = vsel %vm1268_vm4, %v1421_v8, %v1500_v17 }
 0x50b   :  { %v1555_v56 = vsel %vm68_vm0, %v1553_v29, %v1508_v18 }
 0x50d   :  { %v1502_v51 = vpop.permute.xlu1 %1501  ;;  %v1524_v52 = vpop.permute.xlu0 %1523 }
 0x50e   :  { %v1554_v54 = vsel %vm1268_vm4, %v2968_v31, %v1502_v51 }
 0x511   :  { %v1510_v53 = vpop.permute.xlu1 %1509  ;;  %v1516_v55 = vpop.permute.xlu0 %1515 }
 0x512   :  { %v1558_v57 = vsel %vm1557_vm6, %v1555_v56, %v1516_v55  ;;  %v1556_v16 = vsel %vm68_vm0, %v1554_v54, %v1510_v53 }
 0x513   :  { %v1561_v33 = vsel %vm1560_vm7, %v1558_v57, %v1524_v52 }
 0x515   :  { %v1526_v30 = vpop.permute.xlu1 %1525  ;;  %v1532_v45 = vpop.permute.xlu0 %1531 }
 0x516   :  { %v1564_v3 = vsel %vm1563_vm8, %v1561_v33, %v1532_v45 }
 0x519   :  { %v1518_v37 = vpop.permute.xlu1 %1517  ;;  %v1540_v7 = vpop.permute.xlu0 %1539 }
 0x51a   :  { %v1567_v0 = vsel %vm1566_vm9, %v1564_v3, %v1540_v7  ;;  %v1559_v13 = vsel %vm1557_vm6, %v1556_v16, %v1518_v37 }
 0x51b   :  { %v1562_v42 = vsel %vm1560_vm7, %v1559_v13, %v1526_v30 }
 0x51d   :  { %v1534_v4 = vpop.permute.xlu1 %1533  ;;  %v1548_v23 = vpop.permute.xlu0 %1547 }
 0x51e   :  { %v1570_v20 = vsel %vm1569_vm10, %v1567_v0, %v1548_v23  ;;  %v1565_v60 = vsel %vm1563_vm8, %v1562_v42, %v1534_v4 }
 0x51f   :  { %1716 = vst.msk [vmem:[#allocation2] sm:$0x1] %vm3000_vm11, %v1570_v20  ;;  %1967 = vmatmul.mubr.f32.vlgmr.msra.gmra.mrb[10].mxu1 %v1570_v20 }
 0x521   :  { %v1542_v49 = vpop.permute.xlu1 %1541 }
 0x522   :  { %v1568_v63 = vsel %vm1566_vm9, %v1565_v60, %v1542_v49 }
 0x525   :  { %v1550_v62 = vpop.permute.xlu1 %1549 }
 0x526   :  { %v1571_v22 = vsel %vm1569_vm10, %v1568_v63, %v1550_v62 }
 0x527   :  { %1717 = vst.msk [vmem:[#allocation2 + $0x2] sm:$0x1] %vm3000_vm11, %v1571_v22  ;;  %2002 = vmatmul.mubr.f32.vlgmr.msra.gmra.mrb[24].mxu0 %v1571_v22 }
 0x5f2   :  { %v1638_v38 = vpop.f32.mrb[10].mxu1 }
 0x5f3   :  { %1720 = vst.msk [vmem:[#allocation2 + $0x1] sm:$0x1] %vm1718_vm13, %v1638_v38  ;;  %v1968_v1 = vpop.f32.mrb[11].mxu1 }
 0x5f4   :  { %1724 = vst.msk [vmem:[#allocation2 + $0x1] sm:$0x1] %vm1723_vm14, %v2199_v11 }
 0x5fa   :  { %v1708_v35 = vpop.f32.mrb[24].mxu0 }
 0x5fb   :  { %1721 = vst.msk [vmem:[#allocation2 + $0x3] sm:$0x1] %vm1718_vm13, %v1708_v35  ;;  %v2003_v43 = vpop.f32.mrb[25].mxu0 }
 0x5fc   :  { %1725 = vst.msk [vmem:[#allocation2 + $0x3] sm:$0x1] %vm1723_vm14, %v2199_v11 }
 0x5fd   :  { %2182 = shalt.err (!%p2179_p4)
}
 0x5fe   :  { %s2183_s22 = scalar_lea.hbm %s3046_s8, 64 }
 0x5ff   :  { %p2184_p5 = scmp.ne.s32.totalorder %s3046_s8, %s2183_s22  ;;  %p2187_p6 = scmp.lt.u32.totalorder %s2183_s22, %s3046_s8 }
 0x601   :  { %p2189_p7 = pnand %p2187_p6, %p2184_p5 }
 0x603   :  { %2192 = shalt.err (!%p2189_p7)
}
 0x604   :  { %s2209_s25 = smov 2  }
 0x605   :  { %1737 = dma.vmem_to_hbm [thread:$0]  %s1732_s0, 64, %s3046_s8, [#allocation3], %s2201_s12, %s2201_s12, %s2209_s25  }
 0x606   :  { %2193 = dma.done.wait [#allocation3], 64  }
 0x607   :  { %2194 = vsyncadd [#allocation3], 4294967232 }
 0x608   :  { %1741 = vsyncpa [#allocation3], 1 }

</bundles_post_ra>
